<compile_context>
chip_gen: v6e
topology: v6e:2x2x1
jax: 0.10.0
libtpu: 0.0.40
codegen_flags: <defaults>
</compile_context>

<pallas_src>
import functools
import math

import numpy as np
import jax
import jax.numpy as jnp
from jax import lax
from jax.experimental import pallas as pl
from jax.experimental.pallas import tpu as pltpu

# ------------------------- hyper-parameters (deterministic) -----------------
NB = 8            # radial (Bessel) basis size
NA = 8            # angular (Gaussian) basis size
SH_DIM = 9        # spherical harmonics l = 0,1,2  ->  1 + 3 + 5
R_MAX = 5.0       # cutoff radius
LANES = 128       # TPU lane width
SUB_MAX = 128     # max sublane rows per grid step  -> 16384 edges / step
SUB_ALIGN = 16    # keep sub a multiple of 16 (native bf16 (16,128) tile)

_SQRT3 = math.sqrt(3.0)
_SQRT5 = math.sqrt(5.0)
_SQRT15 = _SQRT3 * _SQRT5
_PREF = 2.0 / R_MAX                 # Bessel prefactor
_FREQ1 = math.pi / R_MAX            # base Bessel frequency
_DELTA = 2.0 / (NA - 1)             # Gaussian RBF spacing on [-1, 1]
_GAMMA = 1.0 / (_DELTA * _DELTA)    # Gaussian RBF width
_TWO_GD = 2.0 * _GAMMA * _DELTA     # = 7.0 for the factorized RBF
# exp(-gamma * c_k^2) compile-time constants of the factorized Gaussian RBF
_RBF_CONST = tuple(math.exp(-_GAMMA * (-1.0 + _DELTA * k) ** 2) for k in range(NA))


# ------------------------- in-kernel helper math -----------------------------
def _bessel_rows(r, inv_r):
    """prefactor * sin(n*pi*r/r_max) / r for n=1..NB.

    Chebyshev recurrence sin((n+1)t) = 2 cos(t) sin(n t) - sin((n-1)t):
    only one sin + one cos hit the EUP per call.
    """
    t = _FREQ1 * r
    s1 = jnp.sin(t)
    c1 = jnp.cos(t)
    two_c = c1 + c1
    rows = [s1]
    s_prev, s_cur = s1, two_c * s1          # sin(t), sin(2t)
    rows.append(s_cur)
    for _ in range(NB - 2):
        s_next = two_c * s_cur - s_prev
        rows.append(s_next)
        s_prev, s_cur = s_cur, s_next
    scale = _PREF * inv_r
    return [row * scale for row in rows]


def _poly_cutoff(r):
    """PolynomialCutoff (p=6), Horner form: 1 + x^6*(-28 + x*(48 - 21x))."""
    x = r * (1.0 / R_MAX)
    x2 = x * x
    x6 = x2 * x2 * x2
    f = 1.0 + x6 * (-28.0 + x * (48.0 - 21.0 * x))
    return jnp.where(x < 1.0, f, jnp.zeros_like(f))


# ------------------------------ the kernel -----------------------------------
def edge_embed_kernel(vec_ref, sid_ref, tab_ref,
                      r_ref, emb_ref, attr_ref, ang_ref, *, n_struct):
    # vec_ref : (3, sub, 128) f32  — per-edge vectors, edges lane-dense
    # sid_ref : (sub, 128)   i32  — per-edge structure id
    # tab_ref : SMEM (n_struct*9,) f32 — normalized cell rows per structure
    x = vec_ref[0]
    y = vec_ref[1]
    z = vec_ref[2]

    r2 = x * x + y * y + z * z
    # NOTE: r == 0 on a *real* edge gives inf/nan exactly like the torch module;
    # padded rows carry a unit vector so padding is always finite.
    inv_r = lax.rsqrt(r2)
    r = r2 * inv_r                           # |r|
    r_ref[...] = r

    # EDGE_EMBEDDING = basis(r) * cutoff(r)
    fc = _poly_cutoff(r)
    bes = _bessel_rows(r, inv_r)
    for n in range(NB):
        emb_ref[n] = (bes[n] * fc).astype(emb_ref.dtype)

    # EDGE_ATTR = spherical harmonics of rvec (lmax=2, component-normalized)
    ux = x * inv_r
    uy = y * inv_r
    uz = z * inv_r
    od = attr_ref.dtype
    attr_ref[0] = jnp.ones_like(r).astype(od)
    attr_ref[1] = (_SQRT3 * ux).astype(od)
    attr_ref[2] = (_SQRT3 * uy).astype(od)
    attr_ref[3] = (_SQRT3 * uz).astype(od)
    attr_ref[4] = (_SQRT15 * (ux * uz)).astype(od)
    attr_ref[5] = (_SQRT15 * (ux * uy)).astype(od)
    attr_ref[6] = (_SQRT5 * (uy * uy - 0.5 * (ux * ux + uz * uz))).astype(od)
    attr_ref[7] = (_SQRT15 * (uy * uz)).astype(od)
    attr_ref[8] = (0.5 * _SQRT15 * (uz * uz - ux * ux)).astype(od)

    # ---- edge-conv branch: angle (bond_sine vs. normalized cell rows) --------
    # Expand the per-structure normalized cell rows per edge (id + table in
    # SMEM instead of 36 B/edge of replicated cells).
    # TODO(synk): for very large n_struct this O(n_struct) select loop should be
    # replaced with a gathered VMEM table.
    sid = sid_ref[...]
    rowv = [tab_ref[c] for c in range(9)]            # structure-0 scalars
    for s in range(1, n_struct):
        m = sid == s
        rowv = [jnp.where(m, tab_ref[9 * s + c], rowv[c]) for c in range(9)]

    for i in range(3):
        a0, a1, a2 = rowv[3 * i], rowv[3 * i + 1], rowv[3 * i + 2]
        cosang = a0 * ux + a1 * uy + a2 * uz
        sine = jnp.sqrt(jnp.maximum(1.0 - cosang * cosang, 0.0))   # in [0, 1]
        # Factorized Gaussian RBF: exp(-g (s - c_k)^2) = A * C^k * D_k,
        # A = exp(-g s (s+2)), C = exp(2 g delta s), D_k compile-time constant.
        # Only 2 EUP exps per cell row instead of NA=8.
        amp = jnp.exp(-_GAMMA * sine * (sine + 2.0))
        cfac = jnp.exp(_TWO_GD * sine)
        cpow = None
        for k in range(NA):
            val = amp * _RBF_CONST[k] if k == 0 else (amp * cpow) * _RBF_CONST[k]
            ang_ref[i * NA + k] = val.astype(ang_ref.dtype)
            if k + 1 < NA:
                cpow = cfac if k == 0 else cpow * cfac


# ------------------------------ wrapper --------------------------------------
def _round_up(n, m):
    return ((n + m - 1) // m) * m


def _bessel_direct(x):
    """prefactor * sin(n*pi*x/r_max) / x, n = 1..NB  (tiny pure-XLA helper)."""
    n = jnp.arange(1, NB + 1, dtype=jnp.float32)
    return _PREF * jnp.sin(x[..., None] * (_FREQ1 * n)) / x[..., None]


@functools.partial(jax.jit, static_argnames=("out_dtype", "feature_major"))
def edge_embedding_forward(edge_vec, cell, batch, edge_idx,
                           out_dtype=jnp.float32, feature_major=False):
    """Returns EDGE_LENGTH, EDGE_EMBEDDING, EDGE_ATTR, ANGLE_EMBEDDING,
    LATTICE_EMBEDDING (mirrors the torch data keys).

    out_dtype=jnp.bfloat16 halves embedding write traffic (v6e/v7x).
    feature_major=True skips the epilogue transposes and returns padded
    feature-major arrays (edges along the flattened last axis, first
    `num_edges` entries valid) — use it if the consumer can take that layout.
    """
    E = edge_vec.shape[0]
    cells3 = cell.reshape(-1, 3, 3).astype(jnp.float32)
    n_struct = cells3.shape[0]

    # ---- tiny per-structure precompute (XLA) ---------------------------------
    row_norm = jnp.linalg.norm(cells3, axis=-1)                   # (S, 3)
    unit_rows = cells3 / row_norm[..., None]                      # (S, 3, 3)
    # LATTICE_EMBEDDING depends only on the structure: compute the (S,3,NB)
    # table once and gather per edge (removes 3 Bessel evals/edge in-kernel).
    lat_table = _bessel_direct(-0.75 / row_norm)                  # (S, 3, NB)

    sid = batch[edge_idx[0]].astype(jnp.int32)                    # (E,)
    lat = lat_table.astype(out_dtype)[sid]                        # (E, 3, NB)

    # ---- edge tiling: edges on (sublane, lane), large tiles, >=2 grid steps --
    e_pad0 = _round_up(E, LANES)
    nrow0 = e_pad0 // LANES
    if nrow0 <= SUB_ALIGN:
        sub = nrow0                                   # tiny problem: one tile
    else:
        n_steps = max(2, -(-nrow0 // SUB_MAX))        # >=2 steps for megacore
        sub = min(SUB_MAX, _round_up(-(-nrow0 // n_steps), SUB_ALIGN))
    nrow = _round_up(nrow0, sub)
    e_pad = nrow * LANES
    grid = (nrow // sub,)

    # pad with SAFE finite values (unit-x vector, structure id 0)
    vec = jnp.zeros((e_pad, 3), jnp.float32).at[:, 0].set(1.0)
    vec = vec.at[:E].set(edge_vec.astype(jnp.float32))
    sid_pad = jnp.zeros((e_pad,), jnp.int32).at[:E].set(sid)

    # TODO(synk): if the graph builder can emit edge_vec feature-major/padded,
    # this pad+transpose pass (~24 B/edge) disappears too.
    vec_t = vec.T.reshape(3, nrow, LANES)
    sid_t = sid_pad.reshape(nrow, LANES)
    tab = unit_rows.reshape(-1)                       # (S*9,) f32 -> SMEM

    itemsize = jnp.dtype(out_dtype).itemsize
    cost = pl.CostEstimate(
        flops=200 * e_pad,
        transcendentals=12 * e_pad,
        bytes_accessed=e_pad * (12 + 4 + 4 + (NB + SH_DIM + 3 * NA) * itemsize)
        + int(tab.size) * 4,
    )

    out_shapes = (
        jax.ShapeDtypeStruct((nrow, LANES), jnp.float32),            # |r|
        jax.ShapeDtypeStruct((NB, nrow, LANES), out_dtype),          # edge emb
        jax.ShapeDtypeStruct((SH_DIM, nrow, LANES), out_dtype),      # edge attr
        jax.ShapeDtypeStruct((3 * NA, nrow, LANES), out_dtype),      # angle emb
    )
    grid_spec = pltpu.PrefetchScalarGridSpec(
        num_scalar_prefetch=0,
        grid=grid,
        in_specs=[
            pl.BlockSpec((3, sub, LANES), lambda i: (0, i, 0)),
            pl.BlockSpec((sub, LANES), lambda i: (i, 0)),
            pl.BlockSpec(memory_space=pltpu.MemorySpace.SMEM),
        ],
        out_specs=[
            pl.BlockSpec((sub, LANES), lambda i: (i, 0)),
            pl.BlockSpec((NB, sub, LANES), lambda i: (0, i, 0)),
            pl.BlockSpec((SH_DIM, sub, LANES), lambda i: (0, i, 0)),
            pl.BlockSpec((3 * NA, sub, LANES), lambda i: (0, i, 0)),
        ],
    )
    r_t, emb_t, attr_t, ang_t = pl.pallas_call(
        functools.partial(edge_embed_kernel, n_struct=n_struct),
        out_shape=out_shapes,
        grid_spec=grid_spec,
        compiler_params=pltpu.CompilerParams(
            dimension_semantics=("parallel",)),
        cost_estimate=cost,
    )(vec_t, sid_t, tab)

    if feature_major:
        # Fast path: no epilogue transposes (they cost as much HBM as the
        # kernel).  Edge e lives at flat index e of the last axis.
        return {
            "num_edges": E,
            "edge_length": r_t.reshape(e_pad),
            "edge_embedding": emb_t.reshape(NB, e_pad),
            "edge_attr": attr_t.reshape(SH_DIM, e_pad),
            "angle_embedding": ang_t.reshape(3 * NA, e_pad),
            "lattice_embedding": lat,                 # already (E, 3, NB)
        }

    # ---- layout plumbing back to the (E, feat) convention of the module -----
    def back(a, feat):
        return a.reshape(feat, e_pad).T[:E]

    return {
        "edge_length": r_t.reshape(e_pad)[:E],                   # (E,)
        "edge_embedding": back(emb_t, NB),                       # (E, NB)
        "edge_attr": back(attr_t, SH_DIM),                       # (E, 9)
        "angle_embedding": back(ang_t, 3 * NA).reshape(E, 3, NA),# (E, 3, NA)
        "lattice_embedding": lat,                                # (E, 3, NB)
    }


# --------------------- pure-JAX reference (torch semantics) ------------------
def edge_embedding_reference(edge_vec, cell, batch, edge_idx):
    v = edge_vec.astype(jnp.float32)
    E = v.shape[0]
    r = jnp.linalg.norm(v, axis=-1)
    x = r / R_MAX
    fc = jnp.where(x < 1.0, 1.0 - 28.0 * x**6 + 48.0 * x**7 - 21.0 * x**8, 0.0)
    emb = _bessel_direct(r) * fc[:, None]
    u = v / r[:, None]
    ux, uy, uz = u[:, 0], u[:, 1], u[:, 2]
    attr = jnp.stack([
        jnp.ones_like(r), _SQRT3 * ux, _SQRT3 * uy, _SQRT3 * uz,
        _SQRT15 * ux * uz, _SQRT15 * ux * uy,
        _SQRT5 * (uy * uy - 0.5 * (ux * ux + uz * uz)),
        _SQRT15 * uy * uz, 0.5 * _SQRT15 * (uz * uz - ux * ux)], axis=-1)
    cells3 = cell.reshape(-1, 3, 3).astype(jnp.float32)
    sid = batch[edge_idx[0]]
    neigh = cells3[sid]                                            # (E, 3, 3)
    r2 = jnp.broadcast_to(v[:, None, :], (E, 3, 3))
    sine = (jnp.linalg.norm(jnp.cross(neigh, r2, axis=-1), axis=-1)
            / (jnp.linalg.norm(neigh, axis=-1) * r[:, None]))
    sine = jnp.clip(sine, -1.0, 1.0)
    centers = -1.0 + _DELTA * jnp.arange(NA, dtype=jnp.float32)
    ang = jnp.exp(-_GAMMA * (sine[..., None] - centers) ** 2)      # (E, 3, NA)
    lat = _bessel_direct(-0.75 / jnp.linalg.norm(cells3, axis=-1))[sid]
    return {"edge_length": r, "edge_embedding": emb, "edge_attr": attr,
            "angle_embedding": ang, "lattice_embedding": lat}


# ------------------------------ demo ------------------------------------------
if __name__ == "__main__":
    key = jax.random.PRNGKey(0)
    k1, k2 = jax.random.split(key)

    E = 2200          # exercises padding and a 2-step ("parallel") grid
    N_ATOMS = 64
    N_BATCH = 2

    # edge vectors with comfortably non-zero norms
    edge_vec = jax.random.normal(k1, (E, 3), jnp.float32) * 1.5 + 0.3

    # per-structure cells: diagonally dominant so rows have non-zero norm
    cell = (4.0 * jnp.eye(3, dtype=jnp.float32)[None].repeat(N_BATCH, axis=0)
            + 0.2 * jax.random.normal(k2, (N_BATCH, 3, 3), jnp.float32))

    # atom -> structure assignment, edge -> source atom index
    batch = jnp.concatenate([jnp.zeros(N_ATOMS // 2, jnp.int32),
                             jnp.ones(N_ATOMS - N_ATOMS // 2, jnp.int32)])
    src = jnp.arange(E, dtype=jnp.int32) % N_ATOMS
    dst = (jnp.arange(E, dtype=jnp.int32) + 7) % N_ATOMS
    edge_idx = jnp.stack([src, dst], axis=0)                      # (2, E)

    out = edge_embedding_forward(edge_vec, cell, batch, edge_idx)
    jax.block_until_ready(out)

    assert out["edge_length"].shape == (E,)
    assert out["edge_embedding"].shape == (E, NB)
    assert out["edge_attr"].shape == (E, SH_DIM)
    assert out["angle_embedding"].shape == (E, 3, NA)
    assert out["lattice_embedding"].shape == (E, 3, NB)
    for k in ("edge_length", "edge_embedding", "edge_attr",
              "angle_embedding", "lattice_embedding"):
        assert bool(jnp.all(jnp.isfinite(out[k]))), f"non-finite values in {k}"

    # correctness vs. pure-JAX reference of the same sub-module instantiation
    ref = edge_embedding_reference(edge_vec, cell, batch, edge_idx)
    np.testing.assert_allclose(out["edge_length"], ref["edge_length"],
                               rtol=1e-5, atol=1e-5)
    np.testing.assert_allclose(out["edge_embedding"], ref["edge_embedding"],
                               rtol=1e-4, atol=5e-5)
    np.testing.assert_allclose(out["edge_attr"], ref["edge_attr"],
                               rtol=1e-4, atol=1e-5)
    np.testing.assert_allclose(out["angle_embedding"], ref["angle_embedding"],
                               rtol=1e-2, atol=1e-3)
    np.testing.assert_allclose(out["lattice_embedding"], ref["lattice_embedding"],
                               rtol=1e-5, atol=1e-6)

    # feature-major fast path (no epilogue transposes) also runs
    fm = edge_embedding_forward(edge_vec, cell, batch, edge_idx,
                                feature_major=True)
    jax.block_until_ready(fm)

    print("KERNEL_OK")
</pallas_src>

<mosaic_0001>
module attributes {stable_mosaic.version = 11 : i64} {
  func.func @edge_embed_kernel(%arg0: i32, %arg1: memref<3x16x128xf32, #tpu.memory_space<vmem>>, %arg2: memref<16x128xi32, #tpu.memory_space<vmem>>, %arg3: memref<18xf32, #tpu.memory_space<smem>>, %arg4: memref<16x128xf32, #tpu.memory_space<vmem>>, %arg5: memref<8x16x128xf32, #tpu.memory_space<vmem>>, %arg6: memref<9x16x128xf32, #tpu.memory_space<vmem>>, %arg7: memref<24x16x128xf32, #tpu.memory_space<vmem>>) attributes {dimension_semantics = [#tpu.dimension_semantics<parallel>], iteration_bounds = array<i64: 2>, scalar_prefetch = 0 : i64, scratch_operands = 0 : i64, tpu.core_type = #tpu.core_type<tc>, window_params = [{transform_indices = @transform_0, window_bounds = array<i64: 3, 16, 128>}, {transform_indices = @transform_1, window_bounds = array<i64: 16, 128>}, {transform_indices = @transform_2, window_bounds = array<i64: 18>}, {transform_indices = @transform_3, window_bounds = array<i64: 16, 128>}, {transform_indices = @transform_4, window_bounds = array<i64: 8, 16, 128>}, {transform_indices = @transform_5, window_bounds = array<i64: 9, 16, 128>}, {transform_indices = @transform_6, window_bounds = array<i64: 24, 16, 128>}]} {
    %c0 = arith.constant 0 : index
    %c0_0 = arith.constant 0 : index
    %c0_1 = arith.constant 0 : index
    %0 = vector.load %arg1[%c0, %c0_0, %c0_1] : memref<3x16x128xf32, #tpu.memory_space<vmem>>, vector<1x16x128xf32>
    %1 = vector.shape_cast %0 : vector<1x16x128xf32> to vector<16x128xf32>
    %c1 = arith.constant 1 : index
    %c0_2 = arith.constant 0 : index
    %c0_3 = arith.constant 0 : index
    %2 = vector.load %arg1[%c1, %c0_2, %c0_3] : memref<3x16x128xf32, #tpu.memory_space<vmem>>, vector<1x16x128xf32>
    %3 = vector.shape_cast %2 : vector<1x16x128xf32> to vector<16x128xf32>
    %c2 = arith.constant 2 : index
    %c0_4 = arith.constant 0 : index
    %c0_5 = arith.constant 0 : index
    %4 = vector.load %arg1[%c2, %c0_4, %c0_5] : memref<3x16x128xf32, #tpu.memory_space<vmem>>, vector<1x16x128xf32>
    %5 = vector.shape_cast %4 : vector<1x16x128xf32> to vector<16x128xf32>
    %6 = arith.mulf %1, %1 : vector<16x128xf32>
    %7 = arith.mulf %3, %3 : vector<16x128xf32>
    %8 = arith.addf %6, %7 : vector<16x128xf32>
    %9 = arith.mulf %5, %5 : vector<16x128xf32>
    %10 = arith.addf %8, %9 : vector<16x128xf32>
    %11 = math.rsqrt %10 : vector<16x128xf32>
    %12 = arith.mulf %10, %11 : vector<16x128xf32>
    %c0_6 = arith.constant 0 : index
    %c0_7 = arith.constant 0 : index
    %13 = vector.load %arg4[%c0_6, %c0_7] : memref<16x128xf32, #tpu.memory_space<vmem>>, vector<16x128xf32>
    tpu.vector_store %arg4[%c0_6, %c0_7], %12 {strides = array<i32>} : memref<16x128xf32, #tpu.memory_space<vmem>>, vector<16x128xf32>,
    %cst = arith.constant 2.000000e-01 : f32
    %14 = vector.broadcast %cst : f32 to vector<16x128xf32>
    %15 = arith.mulf %12, %14 : vector<16x128xf32>
    %16 = arith.mulf %15, %15 : vector<16x128xf32>
    %17 = arith.mulf %16, %16 : vector<16x128xf32>
    %18 = arith.mulf %17, %16 : vector<16x128xf32>
    %cst_8 = arith.constant 2.100000e+01 : f32
    %19 = vector.broadcast %cst_8 : f32 to vector<16x128xf32>
    %20 = arith.mulf %19, %15 : vector<16x128xf32>
    %cst_9 = arith.constant 4.800000e+01 : f32
    %21 = vector.broadcast %cst_9 : f32 to vector<16x128xf32>
    %22 = arith.subf %21, %20 : vector<16x128xf32>
    %23 = arith.mulf %15, %22 : vector<16x128xf32>
    %cst_10 = arith.constant -2.800000e+01 : f32
    %24 = vector.broadcast %cst_10 : f32 to vector<16x128xf32>
    %25 = arith.addf %24, %23 : vector<16x128xf32>
    %26 = arith.mulf %18, %25 : vector<16x128xf32>
    %cst_11 = arith.constant 1.000000e+00 : f32
    %27 = vector.broadcast %cst_11 : f32 to vector<16x128xf32>
    %28 = arith.addf %27, %26 : vector<16x128xf32>
    %cst_12 = arith.constant 1.000000e+00 : f32
    %29 = vector.broadcast %cst_12 : f32 to vector<16x128xf32>
    %30 = arith.cmpf olt, %15, %29 : vector<16x128xf32>
    %cst_13 = arith.constant 0.000000e+00 : f32
    %31 = vector.broadcast %cst_13 : f32 to vector<16x128xf32>
    %32 = arith.select %30, %28, %31 : vector<16x128xi1>, vector<16x128xf32>
    %cst_14 = arith.constant 0.628318548 : f32
    %33 = vector.broadcast %cst_14 : f32 to vector<16x128xf32>
    %34 = arith.mulf %33, %12 : vector<16x128xf32>
    %35 = math.sin %34 : vector<16x128xf32>
    %36 = math.cos %34 : vector<16x128xf32>
    %37 = arith.addf %36, %36 : vector<16x128xf32>
    %38 = arith.mulf %37, %35 : vector<16x128xf32>
    %39 = arith.mulf %37, %38 : vector<16x128xf32>
    %40 = arith.subf %39, %35 : vector<16x128xf32>
    %41 = arith.mulf %37, %40 : vector<16x128xf32>
    %42 = arith.subf %41, %38 : vector<16x128xf32>
    %43 = arith.mulf %37, %42 : vector<16x128xf32>
    %44 = arith.subf %43, %40 : vector<16x128xf32>
    %45 = arith.mulf %37, %44 : vector<16x128xf32>
    %46 = arith.subf %45, %42 : vector<16x128xf32>
    %47 = arith.mulf %37, %46 : vector<16x128xf32>
    %48 = arith.subf %47, %44 : vector<16x128xf32>
    %49 = arith.mulf %37, %48 : vector<16x128xf32>
    %50 = arith.subf %49, %46 : vector<16x128xf32>
    %cst_15 = arith.constant 4.000000e-01 : f32
    %51 = vector.broadcast %cst_15 : f32 to vector<16x128xf32>
    %52 = arith.mulf %51, %11 : vector<16x128xf32>
    %53 = arith.mulf %35, %52 : vector<16x128xf32>
    %54 = arith.mulf %38, %52 : vector<16x128xf32>
    %55 = arith.mulf %40, %52 : vector<16x128xf32>
    %56 = arith.mulf %42, %52 : vector<16x128xf32>
    %57 = arith.mulf %44, %52 : vector<16x128xf32>
    %58 = arith.mulf %46, %52 : vector<16x128xf32>
    %59 = arith.mulf %48, %52 : vector<16x128xf32>
    %60 = arith.mulf %50, %52 : vector<16x128xf32>
    %61 = arith.mulf %53, %32 : vector<16x128xf32>
    %c0_16 = arith.constant 0 : index
    %c0_17 = arith.constant 0 : index
    %c0_18 = arith.constant 0 : index
    %62 = vector.load %arg5[%c0_16, %c0_17, %c0_18] : memref<8x16x128xf32, #tpu.memory_space<vmem>>, vector<1x16x128xf32>
    %63 = vector.shape_cast %62 : vector<1x16x128xf32> to vector<16x128xf32>
    %64 = vector.shape_cast %61 : vector<16x128xf32> to vector<1x16x128xf32>
    tpu.vector_store %arg5[%c0_16, %c0_17, %c0_18], %64 {strides = array<i32>} : memref<8x16x128xf32, #tpu.memory_space<vmem>>, vector<1x16x128xf32>,
    %65 = arith.mulf %54, %32 : vector<16x128xf32>
    %c1_19 = arith.constant 1 : index
    %c0_20 = arith.constant 0 : index
    %c0_21 = arith.constant 0 : index
    %66 = vector.load %arg5[%c1_19, %c0_20, %c0_21] : memref<8x16x128xf32, #tpu.memory_space<vmem>>, vector<1x16x128xf32>
    %67 = vector.shape_cast %66 : vector<1x16x128xf32> to vector<16x128xf32>
    %68 = vector.shape_cast %65 : vector<16x128xf32> to vector<1x16x128xf32>
    tpu.vector_store %arg5[%c1_19, %c0_20, %c0_21], %68 {strides = array<i32>} : memref<8x16x128xf32, #tpu.memory_space<vmem>>, vector<1x16x128xf32>,
    %69 = arith.mulf %55, %32 : vector<16x128xf32>
    %c2_22 = arith.constant 2 : index
    %c0_23 = arith.constant 0 : index
    %c0_24 = arith.constant 0 : index
    %70 = vector.load %arg5[%c2_22, %c0_23, %c0_24] : memref<8x16x128xf32, #tpu.memory_space<vmem>>, vector<1x16x128xf32>
    %71 = vector.shape_cast %70 : vector<1x16x128xf32> to vector<16x128xf32>
    %72 = vector.shape_cast %69 : vector<16x128xf32> to vector<1x16x128xf32>
    tpu.vector_store %arg5[%c2_22, %c0_23, %c0_24], %72 {strides = array<i32>} : memref<8x16x128xf32, #tpu.memory_space<vmem>>, vector<1x16x128xf32>,
    %73 = arith.mulf %56, %32 : vector<16x128xf32>
    %c3 = arith.constant 3 : index
    %c0_25 = arith.constant 0 : index
    %c0_26 = arith.constant 0 : index
    %74 = vector.load %arg5[%c3, %c0_25, %c0_26] : memref<8x16x128xf32, #tpu.memory_space<vmem>>, vector<1x16x128xf32>
    %75 = vector.shape_cast %74 : vector<1x16x128xf32> to vector<16x128xf32>
    %76 = vector.shape_cast %73 : vector<16x128xf32> to vector<1x16x128xf32>
    tpu.vector_store %arg5[%c3, %c0_25, %c0_26], %76 {strides = array<i32>} : memref<8x16x128xf32, #tpu.memory_space<vmem>>, vector<1x16x128xf32>,
    %77 = arith.mulf %57, %32 : vector<16x128xf32>
    %c4 = arith.constant 4 : index
    %c0_27 = arith.constant 0 : index
    %c0_28 = arith.constant 0 : index
    %78 = vector.load %arg5[%c4, %c0_27, %c0_28] : memref<8x16x128xf32, #tpu.memory_space<vmem>>, vector<1x16x128xf32>
    %79 = vector.shape_cast %78 : vector<1x16x128xf32> to vector<16x128xf32>
    %80 = vector.shape_cast %77 : vector<16x128xf32> to vector<1x16x128xf32>
    tpu.vector_store %arg5[%c4, %c0_27, %c0_28], %80 {strides = array<i32>} : memref<8x16x128xf32, #tpu.memory_space<vmem>>, vector<1x16x128xf32>,
    %81 = arith.mulf %58, %32 : vector<16x128xf32>
    %c5 = arith.constant 5 : index
    %c0_29 = arith.constant 0 : index
    %c0_30 = arith.constant 0 : index
    %82 = vector.load %arg5[%c5, %c0_29, %c0_30] : memref<8x16x128xf32, #tpu.memory_space<vmem>>, vector<1x16x128xf32>
    %83 = vector.shape_cast %82 : vector<1x16x128xf32> to vector<16x128xf32>
    %84 = vector.shape_cast %81 : vector<16x128xf32> to vector<1x16x128xf32>
    tpu.vector_store %arg5[%c5, %c0_29, %c0_30], %84 {strides = array<i32>} : memref<8x16x128xf32, #tpu.memory_space<vmem>>, vector<1x16x128xf32>,
    %85 = arith.mulf %59, %32 : vector<16x128xf32>
    %c6 = arith.constant 6 : index
    %c0_31 = arith.constant 0 : index
    %c0_32 = arith.constant 0 : index
    %86 = vector.load %arg5[%c6, %c0_31, %c0_32] : memref<8x16x128xf32, #tpu.memory_space<vmem>>, vector<1x16x128xf32>
    %87 = vector.shape_cast %86 : vector<1x16x128xf32> to vector<16x128xf32>
    %88 = vector.shape_cast %85 : vector<16x128xf32> to vector<1x16x128xf32>
    tpu.vector_store %arg5[%c6, %c0_31, %c0_32], %88 {strides = array<i32>} : memref<8x16x128xf32, #tpu.memory_space<vmem>>, vector<1x16x128xf32>,
    %89 = arith.mulf %60, %32 : vector<16x128xf32>
    %c7 = arith.constant 7 : index
    %c0_33 = arith.constant 0 : index
    %c0_34 = arith.constant 0 : index
    %90 = vector.load %arg5[%c7, %c0_33, %c0_34] : memref<8x16x128xf32, #tpu.memory_space<vmem>>, vector<1x16x128xf32>
    %91 = vector.shape_cast %90 : vector<1x16x128xf32> to vector<16x128xf32>
    %92 = vector.shape_cast %89 : vector<16x128xf32> to vector<1x16x128xf32>
    tpu.vector_store %arg5[%c7, %c0_33, %c0_34], %92 {strides = array<i32>} : memref<8x16x128xf32, #tpu.memory_space<vmem>>, vector<1x16x128xf32>,
    %93 = arith.mulf %1, %11 : vector<16x128xf32>
    %94 = arith.mulf %3, %11 : vector<16x128xf32>
    %95 = arith.mulf %5, %11 : vector<16x128xf32>
    %cst_35 = arith.constant 1.000000e+00 : f32
    %96 = vector.broadcast %cst_35 : f32 to vector<16x128xf32>
    %c0_36 = arith.constant 0 : index
    %c0_37 = arith.constant 0 : index
    %c0_38 = arith.constant 0 : index
    %97 = vector.load %arg6[%c0_36, %c0_37, %c0_38] : memref<9x16x128xf32, #tpu.memory_space<vmem>>, vector<1x16x128xf32>
    %98 = vector.shape_cast %97 : vector<1x16x128xf32> to vector<16x128xf32>
    %99 = vector.shape_cast %96 : vector<16x128xf32> to vector<1x16x128xf32>
    tpu.vector_store %arg6[%c0_36, %c0_37, %c0_38], %99 {strides = array<i32>} : memref<9x16x128xf32, #tpu.memory_space<vmem>>, vector<1x16x128xf32>,
    %cst_39 = arith.constant 1.73205078 : f32
    %100 = vector.broadcast %cst_39 : f32 to vector<16x128xf32>
    %101 = arith.mulf %100, %93 : vector<16x128xf32>
    %c1_40 = arith.constant 1 : index
    %c0_41 = arith.constant 0 : index
    %c0_42 = arith.constant 0 : index
    %102 = vector.load %arg6[%c1_40, %c0_41, %c0_42] : memref<9x16x128xf32, #tpu.memory_space<vmem>>, vector<1x16x128xf32>
    %103 = vector.shape_cast %102 : vector<1x16x128xf32> to vector<16x128xf32>
    %104 = vector.shape_cast %101 : vector<16x128xf32> to vector<1x16x128xf32>
    tpu.vector_store %arg6[%c1_40, %c0_41, %c0_42], %104 {strides = array<i32>} : memref<9x16x128xf32, #tpu.memory_space<vmem>>, vector<1x16x128xf32>,
    %cst_43 = arith.constant 1.73205078 : f32
    %105 = vector.broadcast %cst_43 : f32 to vector<16x128xf32>
    %106 = arith.mulf %105, %94 : vector<16x128xf32>
    %c2_44 = arith.constant 2 : index
    %c0_45 = arith.constant 0 : index
    %c0_46 = arith.constant 0 : index
    %107 = vector.load %arg6[%c2_44, %c0_45, %c0_46] : memref<9x16x128xf32, #tpu.memory_space<vmem>>, vector<1x16x128xf32>
    %108 = vector.shape_cast %107 : vector<1x16x128xf32> to vector<16x128xf32>
    %109 = vector.shape_cast %106 : vector<16x128xf32> to vector<1x16x128xf32>
    tpu.vector_store %arg6[%c2_44, %c0_45, %c0_46], %109 {strides = array<i32>} : memref<9x16x128xf32, #tpu.memory_space<vmem>>, vector<1x16x128xf32>,
    %cst_47 = arith.constant 1.73205078 : f32
    %110 = vector.broadcast %cst_47 : f32 to vector<16x128xf32>
    %111 = arith.mulf %110, %95 : vector<16x128xf32>
    %c3_48 = arith.constant 3 : index
    %c0_49 = arith.constant 0 : index
    %c0_50 = arith.constant 0 : index
    %112 = vector.load %arg6[%c3_48, %c0_49, %c0_50] : memref<9x16x128xf32, #tpu.memory_space<vmem>>, vector<1x16x128xf32>
    %113 = vector.shape_cast %112 : vector<1x16x128xf32> to vector<16x128xf32>
    %114 = vector.shape_cast %111 : vector<16x128xf32> to vector<1x16x128xf32>
    tpu.vector_store %arg6[%c3_48, %c0_49, %c0_50], %114 {strides = array<i32>} : memref<9x16x128xf32, #tpu.memory_space<vmem>>, vector<1x16x128xf32>,
    %115 = arith.mulf %93, %95 : vector<16x128xf32>
    %cst_51 = arith.constant 3.87298346 : f32
    %116 = vector.broadcast %cst_51 : f32 to vector<16x128xf32>
    %117 = arith.mulf %116, %115 : vector<16x128xf32>
    %c4_52 = arith.constant 4 : index
    %c0_53 = arith.constant 0 : index
    %c0_54 = arith.constant 0 : index
    %118 = vector.load %arg6[%c4_52, %c0_53, %c0_54] : memref<9x16x128xf32, #tpu.memory_space<vmem>>, vector<1x16x128xf32>
    %119 = vector.shape_cast %118 : vector<1x16x128xf32> to vector<16x128xf32>
    %120 = vector.shape_cast %117 : vector<16x128xf32> to vector<1x16x128xf32>
    tpu.vector_store %arg6[%c4_52, %c0_53, %c0_54], %120 {strides = array<i32>} : memref<9x16x128xf32, #tpu.memory_space<vmem>>, vector<1x16x128xf32>,
    %121 = arith.mulf %93, %94 : vector<16x128xf32>
    %cst_55 = arith.constant 3.87298346 : f32
    %122 = vector.broadcast %cst_55 : f32 to vector<16x128xf32>
    %123 = arith.mulf %122, %121 : vector<16x128xf32>
    %c5_56 = arith.constant 5 : index
    %c0_57 = arith.constant 0 : index
    %c0_58 = arith.constant 0 : index
    %124 = vector.load %arg6[%c5_56, %c0_57, %c0_58] : memref<9x16x128xf32, #tpu.memory_space<vmem>>, vector<1x16x128xf32>
    %125 = vector.shape_cast %124 : vector<1x16x128xf32> to vector<16x128xf32>
    %126 = vector.shape_cast %123 : vector<16x128xf32> to vector<1x16x128xf32>
    tpu.vector_store %arg6[%c5_56, %c0_57, %c0_58], %126 {strides = array<i32>} : memref<9x16x128xf32, #tpu.memory_space<vmem>>, vector<1x16x128xf32>,
    %127 = arith.mulf %94, %94 : vector<16x128xf32>
    %128 = arith.mulf %93, %93 : vector<16x128xf32>
    %129 = arith.mulf %95, %95 : vector<16x128xf32>
    %130 = arith.addf %128, %129 : vector<16x128xf32>
    %cst_59 = arith.constant 5.000000e-01 : f32
    %131 = vector.broadcast %cst_59 : f32 to vector<16x128xf32>
    %132 = arith.mulf %131, %130 : vector<16x128xf32>
    %133 = arith.subf %127, %132 : vector<16x128xf32>
    %cst_60 = arith.constant 2.23606801 : f32
    %134 = vector.broadcast %cst_60 : f32 to vector<16x128xf32>
    %135 = arith.mulf %134, %133 : vector<16x128xf32>
    %c6_61 = arith.constant 6 : index
    %c0_62 = arith.constant 0 : index
    %c0_63 = arith.constant 0 : index
    %136 = vector.load %arg6[%c6_61, %c0_62, %c0_63] : memref<9x16x128xf32, #tpu.memory_space<vmem>>, vector<1x16x128xf32>
    %137 = vector.shape_cast %136 : vector<1x16x128xf32> to vector<16x128xf32>
    %138 = vector.shape_cast %135 : vector<16x128xf32> to vector<1x16x128xf32>
    tpu.vector_store %arg6[%c6_61, %c0_62, %c0_63], %138 {strides = array<i32>} : memref<9x16x128xf32, #tpu.memory_space<vmem>>, vector<1x16x128xf32>,
    %139 = arith.mulf %94, %95 : vector<16x128xf32>
    %cst_64 = arith.constant 3.87298346 : f32
    %140 = vector.broadcast %cst_64 : f32 to vector<16x128xf32>
    %141 = arith.mulf %140, %139 : vector<16x128xf32>
    %c7_65 = arith.constant 7 : index
    %c0_66 = arith.constant 0 : index
    %c0_67 = arith.constant 0 : index
    %142 = vector.load %arg6[%c7_65, %c0_66, %c0_67] : memref<9x16x128xf32, #tpu.memory_space<vmem>>, vector<1x16x128xf32>
    %143 = vector.shape_cast %142 : vector<1x16x128xf32> to vector<16x128xf32>
    %144 = vector.shape_cast %141 : vector<16x128xf32> to vector<1x16x128xf32>
    tpu.vector_store %arg6[%c7_65, %c0_66, %c0_67], %144 {strides = array<i32>} : memref<9x16x128xf32, #tpu.memory_space<vmem>>, vector<1x16x128xf32>,
    %145 = arith.mulf %95, %95 : vector<16x128xf32>
    %146 = arith.mulf %93, %93 : vector<16x128xf32>
    %147 = arith.subf %145, %146 : vector<16x128xf32>
    %cst_68 = arith.constant 1.93649173 : f32
    %148 = vector.broadcast %cst_68 : f32 to vector<16x128xf32>
    %149 = arith.mulf %148, %147 : vector<16x128xf32>
    %c8 = arith.constant 8 : index
    %c0_69 = arith.constant 0 : index
    %c0_70 = arith.constant 0 : index
    %150 = vector.load %arg6[%c8, %c0_69, %c0_70] : memref<9x16x128xf32, #tpu.memory_space<vmem>>, vector<1x16x128xf32>
    %151 = vector.shape_cast %150 : vector<1x16x128xf32> to vector<16x128xf32>
    %152 = vector.shape_cast %149 : vector<16x128xf32> to vector<1x16x128xf32>
    tpu.vector_store %arg6[%c8, %c0_69, %c0_70], %152 {strides = array<i32>} : memref<9x16x128xf32, #tpu.memory_space<vmem>>, vector<1x16x128xf32>,
    %c0_71 = arith.constant 0 : index
    %c0_72 = arith.constant 0 : index
    %153 = vector.load %arg2[%c0_71, %c0_72] : memref<16x128xi32, #tpu.memory_space<vmem>>, vector<16x128xi32>
    %c0_73 = arith.constant 0 : index
    %154 = memref.load %arg3[%c0_73] : memref<18xf32, #tpu.memory_space<smem>>
    %c1_74 = arith.constant 1 : index
    %155 = memref.load %arg3[%c1_74] : memref<18xf32, #tpu.memory_space<smem>>
    %c2_75 = arith.constant 2 : index
    %156 = memref.load %arg3[%c2_75] : memref<18xf32, #tpu.memory_space<smem>>
    %c3_76 = arith.constant 3 : index
    %157 = memref.load %arg3[%c3_76] : memref<18xf32, #tpu.memory_space<smem>>
    %c4_77 = arith.constant 4 : index
    %158 = memref.load %arg3[%c4_77] : memref<18xf32, #tpu.memory_space<smem>>
    %c5_78 = arith.constant 5 : index
    %159 = memref.load %arg3[%c5_78] : memref<18xf32, #tpu.memory_space<smem>>
    %c6_79 = arith.constant 6 : index
    %160 = memref.load %arg3[%c6_79] : memref<18xf32, #tpu.memory_space<smem>>
    %c7_80 = arith.constant 7 : index
    %161 = memref.load %arg3[%c7_80] : memref<18xf32, #tpu.memory_space<smem>>
    %c8_81 = arith.constant 8 : index
    %162 = memref.load %arg3[%c8_81] : memref<18xf32, #tpu.memory_space<smem>>
    %c1_i32 = arith.constant 1 : i32
    %163 = vector.broadcast %c1_i32 : i32 to vector<16x128xi32>
    %164 = arith.cmpi eq, %153, %163 : vector<16x128xi32>
    %c9 = arith.constant 9 : index
    %165 = memref.load %arg3[%c9] : memref<18xf32, #tpu.memory_space<smem>>
    %166 = vector.broadcast %165 : f32 to vector<16x128xf32>
    %167 = vector.broadcast %154 : f32 to vector<16x128xf32>
    %168 = arith.select %164, %166, %167 : vector<16x128xi1>, vector<16x128xf32>
    %c10 = arith.constant 10 : index
    %169 = memref.load %arg3[%c10] : memref<18xf32, #tpu.memory_space<smem>>
    %170 = vector.broadcast %169 : f32 to vector<16x128xf32>
    %171 = vector.broadcast %155 : f32 to vector<16x128xf32>
    %172 = arith.select %164, %170, %171 : vector<16x128xi1>, vector<16x128xf32>
    %c11 = arith.constant 11 : index
    %173 = memref.load %arg3[%c11] : memref<18xf32, #tpu.memory_space<smem>>
    %174 = vector.broadcast %173 : f32 to vector<16x128xf32>
    %175 = vector.broadcast %156 : f32 to vector<16x128xf32>
    %176 = arith.select %164, %174, %175 : vector<16x128xi1>, vector<16x128xf32>
    %c12 = arith.constant 12 : index
    %177 = memref.load %arg3[%c12] : memref<18xf32, #tpu.memory_space<smem>>
    %178 = vector.broadcast %177 : f32 to vector<16x128xf32>
    %179 = vector.broadcast %157 : f32 to vector<16x128xf32>
    %180 = arith.select %164, %178, %179 : vector<16x128xi1>, vector<16x128xf32>
    %c13 = arith.constant 13 : index
    %181 = memref.load %arg3[%c13] : memref<18xf32, #tpu.memory_space<smem>>
    %182 = vector.broadcast %181 : f32 to vector<16x128xf32>
    %183 = vector.broadcast %158 : f32 to vector<16x128xf32>
    %184 = arith.select %164, %182, %183 : vector<16x128xi1>, vector<16x128xf32>
    %c14 = arith.constant 14 : index
    %185 = memref.load %arg3[%c14] : memref<18xf32, #tpu.memory_space<smem>>
    %186 = vector.broadcast %185 : f32 to vector<16x128xf32>
    %187 = vector.broadcast %159 : f32 to vector<16x128xf32>
    %188 = arith.select %164, %186, %187 : vector<16x128xi1>, vector<16x128xf32>
    %c15 = arith.constant 15 : index
    %189 = memref.load %arg3[%c15] : memref<18xf32, #tpu.memory_space<smem>>
    %190 = vector.broadcast %189 : f32 to vector<16x128xf32>
    %191 = vector.broadcast %160 : f32 to vector<16x128xf32>
    %192 = arith.select %164, %190, %191 : vector<16x128xi1>, vector<16x128xf32>
    %c16 = arith.constant 16 : index
    %193 = memref.load %arg3[%c16] : memref<18xf32, #tpu.memory_space<smem>>
    %194 = vector.broadcast %193 : f32 to vector<16x128xf32>
    %195 = vector.broadcast %161 : f32 to vector<16x128xf32>
    %196 = arith.select %164, %194, %195 : vector<16x128xi1>, vector<16x128xf32>
    %c17 = arith.constant 17 : index
    %197 = memref.load %arg3[%c17] : memref<18xf32, #tpu.memory_space<smem>>
    %198 = vector.broadcast %197 : f32 to vector<16x128xf32>
    %199 = vector.broadcast %162 : f32 to vector<16x128xf32>
    %200 = arith.select %164, %198, %199 : vector<16x128xi1>, vector<16x128xf32>
    %201 = arith.mulf %168, %93 : vector<16x128xf32>
    %202 = arith.mulf %172, %94 : vector<16x128xf32>
    %203 = arith.addf %201, %202 : vector<16x128xf32>
    %204 = arith.mulf %176, %95 : vector<16x128xf32>
    %205 = arith.addf %203, %204 : vector<16x128xf32>
    %206 = arith.mulf %205, %205 : vector<16x128xf32>
    %cst_82 = arith.constant 1.000000e+00 : f32
    %207 = vector.broadcast %cst_82 : f32 to vector<16x128xf32>
    %208 = arith.subf %207, %206 : vector<16x128xf32>
    %cst_83 = arith.constant 0.000000e+00 : f32
    %209 = vector.broadcast %cst_83 : f32 to vector<16x128xf32>
    %210 = arith.maximumf %208, %209 : vector<16x128xf32>
    %211 = math.sqrt %210 : vector<16x128xf32>
    %cst_84 = arith.constant -1.225000e+01 : f32
    %212 = vector.broadcast %cst_84 : f32 to vector<16x128xf32>
    %213 = arith.mulf %212, %211 : vector<16x128xf32>
    %cst_85 = arith.constant 2.000000e+00 : f32
    %214 = vector.broadcast %cst_85 : f32 to vector<16x128xf32>
    %215 = arith.addf %211, %214 : vector<16x128xf32>
    %216 = arith.mulf %213, %215 : vector<16x128xf32>
    %217 = math.exp %216 : vector<16x128xf32>
    %cst_86 = arith.constant 7.000000e+00 : f32
    %218 = vector.broadcast %cst_86 : f32 to vector<16x128xf32>
    %219 = arith.mulf %218, %211 : vector<16x128xf32>
    %220 = math.exp %219 : vector<16x128xf32>
    %cst_87 = arith.constant 4.7851172E-6 : f32
    %221 = vector.broadcast %cst_87 : f32 to vector<16x128xf32>
    %222 = arith.mulf %217, %221 : vector<16x128xf32>
    %c0_88 = arith.constant 0 : index
    %c0_89 = arith.constant 0 : index
    %c0_90 = arith.constant 0 : index
    %223 = vector.load %arg7[%c0_88, %c0_89, %c0_90] : memref<24x16x128xf32, #tpu.memory_space<vmem>>, vector<1x16x128xf32>
    %224 = vector.shape_cast %223 : vector<1x16x128xf32> to vector<16x128xf32>
    %225 = vector.shape_cast %222 : vector<16x128xf32> to vector<1x16x128xf32>
    tpu.vector_store %arg7[%c0_88, %c0_89, %c0_90], %225 {strides = array<i32>} : memref<24x16x128xf32, #tpu.memory_space<vmem>>, vector<1x16x128xf32>,
    %226 = arith.mulf %217, %220 : vector<16x128xf32>
    %cst_91 = arith.constant 0.00193045416 : f32
    %227 = vector.broadcast %cst_91 : f32 to vector<16x128xf32>
    %228 = arith.mulf %226, %227 : vector<16x128xf32>
    %c1_92 = arith.constant 1 : index
    %c0_93 = arith.constant 0 : index
    %c0_94 = arith.constant 0 : index
    %229 = vector.load %arg7[%c1_92, %c0_93, %c0_94] : memref<24x16x128xf32, #tpu.memory_space<vmem>>, vector<1x16x128xf32>
    %230 = vector.shape_cast %229 : vector<1x16x128xf32> to vector<16x128xf32>
    %231 = vector.shape_cast %228 : vector<16x128xf32> to vector<1x16x128xf32>
    tpu.vector_store %arg7[%c1_92, %c0_93, %c0_94], %231 {strides = array<i32>} : memref<24x16x128xf32, #tpu.memory_space<vmem>>, vector<1x16x128xf32>,
    %232 = arith.mulf %220, %220 : vector<16x128xf32>
    %233 = arith.mulf %217, %232 : vector<16x128xf32>
    %cst_95 = arith.constant 0.105399221 : f32
    %234 = vector.broadcast %cst_95 : f32 to vector<16x128xf32>
    %235 = arith.mulf %233, %234 : vector<16x128xf32>
    %c2_96 = arith.constant 2 : index
    %c0_97 = arith.constant 0 : index
    %c0_98 = arith.constant 0 : index
    %236 = vector.load %arg7[%c2_96, %c0_97, %c0_98] : memref<24x16x128xf32, #tpu.memory_space<vmem>>, vector<1x16x128xf32>
    %237 = vector.shape_cast %236 : vector<1x16x128xf32> to vector<16x128xf32>
    %238 = vector.shape_cast %235 : vector<16x128xf32> to vector<1x16x128xf32>
    tpu.vector_store %arg7[%c2_96, %c0_97, %c0_98], %238 {strides = array<i32>} : memref<24x16x128xf32, #tpu.memory_space<vmem>>, vector<1x16x128xf32>,
    %239 = arith.mulf %232, %220 : vector<16x128xf32>
    %240 = arith.mulf %217, %239 : vector<16x128xf32>
    %cst_99 = arith.constant 0.778800785 : f32
    %241 = vector.broadcast %cst_99 : f32 to vector<16x128xf32>
    %242 = arith.mulf %240, %241 : vector<16x128xf32>
    %c3_100 = arith.constant 3 : index
    %c0_101 = arith.constant 0 : index
    %c0_102 = arith.constant 0 : index
    %243 = vector.load %arg7[%c3_100, %c0_101, %c0_102] : memref<24x16x128xf32, #tpu.memory_space<vmem>>, vector<1x16x128xf32>
    %244 = vector.shape_cast %243 : vector<1x16x128xf32> to vector<16x128xf32>
    %245 = vector.shape_cast %242 : vector<16x128xf32> to vector<1x16x128xf32>
    tpu.vector_store %arg7[%c3_100, %c0_101, %c0_102], %245 {strides = array<i32>} : memref<24x16x128xf32, #tpu.memory_space<vmem>>, vector<1x16x128xf32>,
    %246 = arith.mulf %239, %220 : vector<16x128xf32>
    %247 = arith.mulf %217, %246 : vector<16x128xf32>
    %cst_103 = arith.constant 0.778800785 : f32
    %248 = vector.broadcast %cst_103 : f32 to vector<16x128xf32>
    %249 = arith.mulf %247, %248 : vector<16x128xf32>
    %c4_104 = arith.constant 4 : index
    %c0_105 = arith.constant 0 : index
    %c0_106 = arith.constant 0 : index
    %250 = vector.load %arg7[%c4_104, %c0_105, %c0_106] : memref<24x16x128xf32, #tpu.memory_space<vmem>>, vector<1x16x128xf32>
    %251 = vector.shape_cast %250 : vector<1x16x128xf32> to vector<16x128xf32>
    %252 = vector.shape_cast %249 : vector<16x128xf32> to vector<1x16x128xf32>
    tpu.vector_store %arg7[%c4_104, %c0_105, %c0_106], %252 {strides = array<i32>} : memref<24x16x128xf32, #tpu.memory_space<vmem>>, vector<1x16x128xf32>,
    %253 = arith.mulf %246, %220 : vector<16x128xf32>
    %254 = arith.mulf %217, %253 : vector<16x128xf32>
    %cst_107 = arith.constant 0.105399221 : f32
    %255 = vector.broadcast %cst_107 : f32 to vector<16x128xf32>
    %256 = arith.mulf %254, %255 : vector<16x128xf32>
    %c5_108 = arith.constant 5 : index
    %c0_109 = arith.constant 0 : index
    %c0_110 = arith.constant 0 : index
    %257 = vector.load %arg7[%c5_108, %c0_109, %c0_110] : memref<24x16x128xf32, #tpu.memory_space<vmem>>, vector<1x16x128xf32>
    %258 = vector.shape_cast %257 : vector<1x16x128xf32> to vector<16x128xf32>
    %259 = vector.shape_cast %256 : vector<16x128xf32> to vector<1x16x128xf32>
    tpu.vector_store %arg7[%c5_108, %c0_109, %c0_110], %259 {strides = array<i32>} : memref<24x16x128xf32, #tpu.memory_space<vmem>>, vector<1x16x128xf32>,
    %260 = arith.mulf %253, %220 : vector<16x128xf32>
    %261 = arith.mulf %217, %260 : vector<16x128xf32>
    %cst_111 = arith.constant 0.00193045416 : f32
    %262 = vector.broadcast %cst_111 : f32 to vector<16x128xf32>
    %263 = arith.mulf %261, %262 : vector<16x128xf32>
    %c6_112 = arith.constant 6 : index
    %c0_113 = arith.constant 0 : index
    %c0_114 = arith.constant 0 : index
    %264 = vector.load %arg7[%c6_112, %c0_113, %c0_114] : memref<24x16x128xf32, #tpu.memory_space<vmem>>, vector<1x16x128xf32>
    %265 = vector.shape_cast %264 : vector<1x16x128xf32> to vector<16x128xf32>
    %266 = vector.shape_cast %263 : vector<16x128xf32> to vector<1x16x128xf32>
    tpu.vector_store %arg7[%c6_112, %c0_113, %c0_114], %266 {strides = array<i32>} : memref<24x16x128xf32, #tpu.memory_space<vmem>>, vector<1x16x128xf32>,
    %267 = arith.mulf %260, %220 : vector<16x128xf32>
    %268 = arith.mulf %217, %267 : vector<16x128xf32>
    %cst_115 = arith.constant 4.7851172E-6 : f32
    %269 = vector.broadcast %cst_115 : f32 to vector<16x128xf32>
    %270 = arith.mulf %268, %269 : vector<16x128xf32>
    %c7_116 = arith.constant 7 : index
    %c0_117 = arith.constant 0 : index
    %c0_118 = arith.constant 0 : index
    %271 = vector.load %arg7[%c7_116, %c0_117, %c0_118] : memref<24x16x128xf32, #tpu.memory_space<vmem>>, vector<1x16x128xf32>
    %272 = vector.shape_cast %271 : vector<1x16x128xf32> to vector<16x128xf32>
    %273 = vector.shape_cast %270 : vector<16x128xf32> to vector<1x16x128xf32>
    tpu.vector_store %arg7[%c7_116, %c0_117, %c0_118], %273 {strides = array<i32>} : memref<24x16x128xf32, #tpu.memory_space<vmem>>, vector<1x16x128xf32>,
    %274 = arith.mulf %180, %93 : vector<16x128xf32>
    %275 = arith.mulf %184, %94 : vector<16x128xf32>
    %276 = arith.addf %274, %275 : vector<16x128xf32>
    %277 = arith.mulf %188, %95 : vector<16x128xf32>
    %278 = arith.addf %276, %277 : vector<16x128xf32>
    %279 = arith.mulf %278, %278 : vector<16x128xf32>
    %cst_119 = arith.constant 1.000000e+00 : f32
    %280 = vector.broadcast %cst_119 : f32 to vector<16x128xf32>
    %281 = arith.subf %280, %279 : vector<16x128xf32>
    %cst_120 = arith.constant 0.000000e+00 : f32
    %282 = vector.broadcast %cst_120 : f32 to vector<16x128xf32>
    %283 = arith.maximumf %281, %282 : vector<16x128xf32>
    %284 = math.sqrt %283 : vector<16x128xf32>
    %cst_121 = arith.constant -1.225000e+01 : f32
    %285 = vector.broadcast %cst_121 : f32 to vector<16x128xf32>
    %286 = arith.mulf %285, %284 : vector<16x128xf32>
    %cst_122 = arith.constant 2.000000e+00 : f32
    %287 = vector.broadcast %cst_122 : f32 to vector<16x128xf32>
    %288 = arith.addf %284, %287 : vector<16x128xf32>
    %289 = arith.mulf %286, %288 : vector<16x128xf32>
    %290 = math.exp %289 : vector<16x128xf32>
    %cst_123 = arith.constant 7.000000e+00 : f32
    %291 = vector.broadcast %cst_123 : f32 to vector<16x128xf32>
    %292 = arith.mulf %291, %284 : vector<16x128xf32>
    %293 = math.exp %292 : vector<16x128xf32>
    %cst_124 = arith.constant 4.7851172E-6 : f32
    %294 = vector.broadcast %cst_124 : f32 to vector<16x128xf32>
    %295 = arith.mulf %290, %294 : vector<16x128xf32>
    %c8_125 = arith.constant 8 : index
    %c0_126 = arith.constant 0 : index
    %c0_127 = arith.constant 0 : index
    %296 = vector.load %arg7[%c8_125, %c0_126, %c0_127] : memref<24x16x128xf32, #tpu.memory_space<vmem>>, vector<1x16x128xf32>
    %297 = vector.shape_cast %296 : vector<1x16x128xf32> to vector<16x128xf32>
    %298 = vector.shape_cast %295 : vector<16x128xf32> to vector<1x16x128xf32>
    tpu.vector_store %arg7[%c8_125, %c0_126, %c0_127], %298 {strides = array<i32>} : memref<24x16x128xf32, #tpu.memory_space<vmem>>, vector<1x16x128xf32>,
    %299 = arith.mulf %290, %293 : vector<16x128xf32>
    %cst_128 = arith.constant 0.00193045416 : f32
    %300 = vector.broadcast %cst_128 : f32 to vector<16x128xf32>
    %301 = arith.mulf %299, %300 : vector<16x128xf32>
    %c9_129 = arith.constant 9 : index
    %c0_130 = arith.constant 0 : index
    %c0_131 = arith.constant 0 : index
    %302 = vector.load %arg7[%c9_129, %c0_130, %c0_131] : memref<24x16x128xf32, #tpu.memory_space<vmem>>, vector<1x16x128xf32>
    %303 = vector.shape_cast %302 : vector<1x16x128xf32> to vector<16x128xf32>
    %304 = vector.shape_cast %301 : vector<16x128xf32> to vector<1x16x128xf32>
    tpu.vector_store %arg7[%c9_129, %c0_130, %c0_131], %304 {strides = array<i32>} : memref<24x16x128xf32, #tpu.memory_space<vmem>>, vector<1x16x128xf32>,
    %305 = arith.mulf %293, %293 : vector<16x128xf32>
    %306 = arith.mulf %290, %305 : vector<16x128xf32>
    %cst_132 = arith.constant 0.105399221 : f32
    %307 = vector.broadcast %cst_132 : f32 to vector<16x128xf32>
    %308 = arith.mulf %306, %307 : vector<16x128xf32>
    %c10_133 = arith.constant 10 : index
    %c0_134 = arith.constant 0 : index
    %c0_135 = arith.constant 0 : index
    %309 = vector.load %arg7[%c10_133, %c0_134, %c0_135] : memref<24x16x128xf32, #tpu.memory_space<vmem>>, vector<1x16x128xf32>
    %310 = vector.shape_cast %309 : vector<1x16x128xf32> to vector<16x128xf32>
    %311 = vector.shape_cast %308 : vector<16x128xf32> to vector<1x16x128xf32>
    tpu.vector_store %arg7[%c10_133, %c0_134, %c0_135], %311 {strides = array<i32>} : memref<24x16x128xf32, #tpu.memory_space<vmem>>, vector<1x16x128xf32>,
    %312 = arith.mulf %305, %293 : vector<16x128xf32>
    %313 = arith.mulf %290, %312 : vector<16x128xf32>
    %cst_136 = arith.constant 0.778800785 : f32
    %314 = vector.broadcast %cst_136 : f32 to vector<16x128xf32>
    %315 = arith.mulf %313, %314 : vector<16x128xf32>
    %c11_137 = arith.constant 11 : index
    %c0_138 = arith.constant 0 : index
    %c0_139 = arith.constant 0 : index
    %316 = vector.load %arg7[%c11_137, %c0_138, %c0_139] : memref<24x16x128xf32, #tpu.memory_space<vmem>>, vector<1x16x128xf32>
    %317 = vector.shape_cast %316 : vector<1x16x128xf32> to vector<16x128xf32>
    %318 = vector.shape_cast %315 : vector<16x128xf32> to vector<1x16x128xf32>
    tpu.vector_store %arg7[%c11_137, %c0_138, %c0_139], %318 {strides = array<i32>} : memref<24x16x128xf32, #tpu.memory_space<vmem>>, vector<1x16x128xf32>,
    %319 = arith.mulf %312, %293 : vector<16x128xf32>
    %320 = arith.mulf %290, %319 : vector<16x128xf32>
    %cst_140 = arith.constant 0.778800785 : f32
    %321 = vector.broadcast %cst_140 : f32 to vector<16x128xf32>
    %322 = arith.mulf %320, %321 : vector<16x128xf32>
    %c12_141 = arith.constant 12 : index
    %c0_142 = arith.constant 0 : index
    %c0_143 = arith.constant 0 : index
    %323 = vector.load %arg7[%c12_141, %c0_142, %c0_143] : memref<24x16x128xf32, #tpu.memory_space<vmem>>, vector<1x16x128xf32>
    %324 = vector.shape_cast %323 : vector<1x16x128xf32> to vector<16x128xf32>
    %325 = vector.shape_cast %322 : vector<16x128xf32> to vector<1x16x128xf32>
    tpu.vector_store %arg7[%c12_141, %c0_142, %c0_143], %325 {strides = array<i32>} : memref<24x16x128xf32, #tpu.memory_space<vmem>>, vector<1x16x128xf32>,
    %326 = arith.mulf %319, %293 : vector<16x128xf32>
    %327 = arith.mulf %290, %326 : vector<16x128xf32>
    %cst_144 = arith.constant 0.105399221 : f32
    %328 = vector.broadcast %cst_144 : f32 to vector<16x128xf32>
    %329 = arith.mulf %327, %328 : vector<16x128xf32>
    %c13_145 = arith.constant 13 : index
    %c0_146 = arith.constant 0 : index
    %c0_147 = arith.constant 0 : index
    %330 = vector.load %arg7[%c13_145, %c0_146, %c0_147] : memref<24x16x128xf32, #tpu.memory_space<vmem>>, vector<1x16x128xf32>
    %331 = vector.shape_cast %330 : vector<1x16x128xf32> to vector<16x128xf32>
    %332 = vector.shape_cast %329 : vector<16x128xf32> to vector<1x16x128xf32>
    tpu.vector_store %arg7[%c13_145, %c0_146, %c0_147], %332 {strides = array<i32>} : memref<24x16x128xf32, #tpu.memory_space<vmem>>, vector<1x16x128xf32>,
    %333 = arith.mulf %326, %293 : vector<16x128xf32>
    %334 = arith.mulf %290, %333 : vector<16x128xf32>
    %cst_148 = arith.constant 0.00193045416 : f32
    %335 = vector.broadcast %cst_148 : f32 to vector<16x128xf32>
    %336 = arith.mulf %334, %335 : vector<16x128xf32>
    %c14_149 = arith.constant 14 : index
    %c0_150 = arith.constant 0 : index
    %c0_151 = arith.constant 0 : index
    %337 = vector.load %arg7[%c14_149, %c0_150, %c0_151] : memref<24x16x128xf32, #tpu.memory_space<vmem>>, vector<1x16x128xf32>
    %338 = vector.shape_cast %337 : vector<1x16x128xf32> to vector<16x128xf32>
    %339 = vector.shape_cast %336 : vector<16x128xf32> to vector<1x16x128xf32>
    tpu.vector_store %arg7[%c14_149, %c0_150, %c0_151], %339 {strides = array<i32>} : memref<24x16x128xf32, #tpu.memory_space<vmem>>, vector<1x16x128xf32>,
    %340 = arith.mulf %333, %293 : vector<16x128xf32>
    %341 = arith.mulf %290, %340 : vector<16x128xf32>
    %cst_152 = arith.constant 4.7851172E-6 : f32
    %342 = vector.broadcast %cst_152 : f32 to vector<16x128xf32>
    %343 = arith.mulf %341, %342 : vector<16x128xf32>
    %c15_153 = arith.constant 15 : index
    %c0_154 = arith.constant 0 : index
    %c0_155 = arith.constant 0 : index
    %344 = vector.load %arg7[%c15_153, %c0_154, %c0_155] : memref<24x16x128xf32, #tpu.memory_space<vmem>>, vector<1x16x128xf32>
    %345 = vector.shape_cast %344 : vector<1x16x128xf32> to vector<16x128xf32>
    %346 = vector.shape_cast %343 : vector<16x128xf32> to vector<1x16x128xf32>
    tpu.vector_store %arg7[%c15_153, %c0_154, %c0_155], %346 {strides = array<i32>} : memref<24x16x128xf32, #tpu.memory_space<vmem>>, vector<1x16x128xf32>,
    %347 = arith.mulf %192, %93 : vector<16x128xf32>
    %348 = arith.mulf %196, %94 : vector<16x128xf32>
    %349 = arith.addf %347, %348 : vector<16x128xf32>
    %350 = arith.mulf %200, %95 : vector<16x128xf32>
    %351 = arith.addf %349, %350 : vector<16x128xf32>
    %352 = arith.mulf %351, %351 : vector<16x128xf32>
    %cst_156 = arith.constant 1.000000e+00 : f32
    %353 = vector.broadcast %cst_156 : f32 to vector<16x128xf32>
    %354 = arith.subf %353, %352 : vector<16x128xf32>
    %cst_157 = arith.constant 0.000000e+00 : f32
    %355 = vector.broadcast %cst_157 : f32 to vector<16x128xf32>
    %356 = arith.maximumf %354, %355 : vector<16x128xf32>
    %357 = math.sqrt %356 : vector<16x128xf32>
    %cst_158 = arith.constant -1.225000e+01 : f32
    %358 = vector.broadcast %cst_158 : f32 to vector<16x128xf32>
    %359 = arith.mulf %358, %357 : vector<16x128xf32>
    %cst_159 = arith.constant 2.000000e+00 : f32
    %360 = vector.broadcast %cst_159 : f32 to vector<16x128xf32>
    %361 = arith.addf %357, %360 : vector<16x128xf32>
    %362 = arith.mulf %359, %361 : vector<16x128xf32>
    %363 = math.exp %362 : vector<16x128xf32>
    %cst_160 = arith.constant 7.000000e+00 : f32
    %364 = vector.broadcast %cst_160 : f32 to vector<16x128xf32>
    %365 = arith.mulf %364, %357 : vector<16x128xf32>
    %366 = math.exp %365 : vector<16x128xf32>
    %cst_161 = arith.constant 4.7851172E-6 : f32
    %367 = vector.broadcast %cst_161 : f32 to vector<16x128xf32>
    %368 = arith.mulf %363, %367 : vector<16x128xf32>
    %c16_162 = arith.constant 16 : index
    %c0_163 = arith.constant 0 : index
    %c0_164 = arith.constant 0 : index
    %369 = vector.load %arg7[%c16_162, %c0_163, %c0_164] : memref<24x16x128xf32, #tpu.memory_space<vmem>>, vector<1x16x128xf32>
    %370 = vector.shape_cast %369 : vector<1x16x128xf32> to vector<16x128xf32>
    %371 = vector.shape_cast %368 : vector<16x128xf32> to vector<1x16x128xf32>
    tpu.vector_store %arg7[%c16_162, %c0_163, %c0_164], %371 {strides = array<i32>} : memref<24x16x128xf32, #tpu.memory_space<vmem>>, vector<1x16x128xf32>,
    %372 = arith.mulf %363, %366 : vector<16x128xf32>
    %cst_165 = arith.constant 0.00193045416 : f32
    %373 = vector.broadcast %cst_165 : f32 to vector<16x128xf32>
    %374 = arith.mulf %372, %373 : vector<16x128xf32>
    %c17_166 = arith.constant 17 : index
    %c0_167 = arith.constant 0 : index
    %c0_168 = arith.constant 0 : index
    %375 = vector.load %arg7[%c17_166, %c0_167, %c0_168] : memref<24x16x128xf32, #tpu.memory_space<vmem>>, vector<1x16x128xf32>
    %376 = vector.shape_cast %375 : vector<1x16x128xf32> to vector<16x128xf32>
    %377 = vector.shape_cast %374 : vector<16x128xf32> to vector<1x16x128xf32>
    tpu.vector_store %arg7[%c17_166, %c0_167, %c0_168], %377 {strides = array<i32>} : memref<24x16x128xf32, #tpu.memory_space<vmem>>, vector<1x16x128xf32>,
    %378 = arith.mulf %366, %366 : vector<16x128xf32>
    %379 = arith.mulf %363, %378 : vector<16x128xf32>
    %cst_169 = arith.constant 0.105399221 : f32
    %380 = vector.broadcast %cst_169 : f32 to vector<16x128xf32>
    %381 = arith.mulf %379, %380 : vector<16x128xf32>
    %c18 = arith.constant 18 : index
    %c0_170 = arith.constant 0 : index
    %c0_171 = arith.constant 0 : index
    %382 = vector.load %arg7[%c18, %c0_170, %c0_171] : memref<24x16x128xf32, #tpu.memory_space<vmem>>, vector<1x16x128xf32>
    %383 = vector.shape_cast %382 : vector<1x16x128xf32> to vector<16x128xf32>
    %384 = vector.shape_cast %381 : vector<16x128xf32> to vector<1x16x128xf32>
    tpu.vector_store %arg7[%c18, %c0_170, %c0_171], %384 {strides = array<i32>} : memref<24x16x128xf32, #tpu.memory_space<vmem>>, vector<1x16x128xf32>,
    %385 = arith.mulf %378, %366 : vector<16x128xf32>
    %386 = arith.mulf %363, %385 : vector<16x128xf32>
    %cst_172 = arith.constant 0.778800785 : f32
    %387 = vector.broadcast %cst_172 : f32 to vector<16x128xf32>
    %388 = arith.mulf %386, %387 : vector<16x128xf32>
    %c19 = arith.constant 19 : index
    %c0_173 = arith.constant 0 : index
    %c0_174 = arith.constant 0 : index
    %389 = vector.load %arg7[%c19, %c0_173, %c0_174] : memref<24x16x128xf32, #tpu.memory_space<vmem>>, vector<1x16x128xf32>
    %390 = vector.shape_cast %389 : vector<1x16x128xf32> to vector<16x128xf32>
    %391 = vector.shape_cast %388 : vector<16x128xf32> to vector<1x16x128xf32>
    tpu.vector_store %arg7[%c19, %c0_173, %c0_174], %391 {strides = array<i32>} : memref<24x16x128xf32, #tpu.memory_space<vmem>>, vector<1x16x128xf32>,
    %392 = arith.mulf %385, %366 : vector<16x128xf32>
    %393 = arith.mulf %363, %392 : vector<16x128xf32>
    %cst_175 = arith.constant 0.778800785 : f32
    %394 = vector.broadcast %cst_175 : f32 to vector<16x128xf32>
    %395 = arith.mulf %393, %394 : vector<16x128xf32>
    %c20 = arith.constant 20 : index
    %c0_176 = arith.constant 0 : index
    %c0_177 = arith.constant 0 : index
    %396 = vector.load %arg7[%c20, %c0_176, %c0_177] : memref<24x16x128xf32, #tpu.memory_space<vmem>>, vector<1x16x128xf32>
    %397 = vector.shape_cast %396 : vector<1x16x128xf32> to vector<16x128xf32>
    %398 = vector.shape_cast %395 : vector<16x128xf32> to vector<1x16x128xf32>
    tpu.vector_store %arg7[%c20, %c0_176, %c0_177], %398 {strides = array<i32>} : memref<24x16x128xf32, #tpu.memory_space<vmem>>, vector<1x16x128xf32>,
    %399 = arith.mulf %392, %366 : vector<16x128xf32>
    %400 = arith.mulf %363, %399 : vector<16x128xf32>
    %cst_178 = arith.constant 0.105399221 : f32
    %401 = vector.broadcast %cst_178 : f32 to vector<16x128xf32>
    %402 = arith.mulf %400, %401 : vector<16x128xf32>
    %c21 = arith.constant 21 : index
    %c0_179 = arith.constant 0 : index
    %c0_180 = arith.constant 0 : index
    %403 = vector.load %arg7[%c21, %c0_179, %c0_180] : memref<24x16x128xf32, #tpu.memory_space<vmem>>, vector<1x16x128xf32>
    %404 = vector.shape_cast %403 : vector<1x16x128xf32> to vector<16x128xf32>
    %405 = vector.shape_cast %402 : vector<16x128xf32> to vector<1x16x128xf32>
    tpu.vector_store %arg7[%c21, %c0_179, %c0_180], %405 {strides = array<i32>} : memref<24x16x128xf32, #tpu.memory_space<vmem>>, vector<1x16x128xf32>,
    %406 = arith.mulf %399, %366 : vector<16x128xf32>
    %407 = arith.mulf %363, %406 : vector<16x128xf32>
    %cst_181 = arith.constant 0.00193045416 : f32
    %408 = vector.broadcast %cst_181 : f32 to vector<16x128xf32>
    %409 = arith.mulf %407, %408 : vector<16x128xf32>
    %c22 = arith.constant 22 : index
    %c0_182 = arith.constant 0 : index
    %c0_183 = arith.constant 0 : index
    %410 = vector.load %arg7[%c22, %c0_182, %c0_183] : memref<24x16x128xf32, #tpu.memory_space<vmem>>, vector<1x16x128xf32>
    %411 = vector.shape_cast %410 : vector<1x16x128xf32> to vector<16x128xf32>
    %412 = vector.shape_cast %409 : vector<16x128xf32> to vector<1x16x128xf32>
    tpu.vector_store %arg7[%c22, %c0_182, %c0_183], %412 {strides = array<i32>} : memref<24x16x128xf32, #tpu.memory_space<vmem>>, vector<1x16x128xf32>,
    %413 = arith.mulf %406, %366 : vector<16x128xf32>
    %414 = arith.mulf %363, %413 : vector<16x128xf32>
    %cst_184 = arith.constant 4.7851172E-6 : f32
    %415 = vector.broadcast %cst_184 : f32 to vector<16x128xf32>
    %416 = arith.mulf %414, %415 : vector<16x128xf32>
    %c23 = arith.constant 23 : index
    %c0_185 = arith.constant 0 : index
    %c0_186 = arith.constant 0 : index
    %417 = vector.load %arg7[%c23, %c0_185, %c0_186] : memref<24x16x128xf32, #tpu.memory_space<vmem>>, vector<1x16x128xf32>
    %418 = vector.shape_cast %417 : vector<1x16x128xf32> to vector<16x128xf32>
    %419 = vector.shape_cast %416 : vector<16x128xf32> to vector<1x16x128xf32>
    tpu.vector_store %arg7[%c23, %c0_185, %c0_186], %419 {strides = array<i32>} : memref<24x16x128xf32, #tpu.memory_space<vmem>>, vector<1x16x128xf32>,
    return
  }
  func.func @transform_0(%arg0: i32) -> (i32, i32, i32) {
    %c0_i32 = arith.constant 0 : i32
    %c0_i32_0 = arith.constant 0 : i32
    %c0_i32_1 = arith.constant 0 : i32
    return %c0_i32, %arg0, %c0_i32_0 : i32, i32, i32
  }
  func.func @transform_1(%arg0: i32) -> (i32, i32) {
    %c0_i32 = arith.constant 0 : i32
    %c0_i32_0 = arith.constant 0 : i32
    return %arg0, %c0_i32 : i32, i32
  }
  func.func @transform_2(%arg0: i32) -> i32 {
    %c0_i32 = arith.constant 0 : i32
    %c0_i32_0 = arith.constant 0 : i32
    return %c0_i32 : i32
  }
  func.func @transform_3(%arg0: i32) -> (i32, i32) {
    %c0_i32 = arith.constant 0 : i32
    %c0_i32_0 = arith.constant 0 : i32
    return %arg0, %c0_i32 : i32, i32
  }
  func.func @transform_4(%arg0: i32) -> (i32, i32, i32) {
    %c0_i32 = arith.constant 0 : i32
    %c0_i32_0 = arith.constant 0 : i32
    %c0_i32_1 = arith.constant 0 : i32
    return %c0_i32, %arg0, %c0_i32_0 : i32, i32, i32
  }
  func.func @transform_5(%arg0: i32) -> (i32, i32, i32) {
    %c0_i32 = arith.constant 0 : i32
    %c0_i32_0 = arith.constant 0 : i32
    %c0_i32_1 = arith.constant 0 : i32
    return %c0_i32, %arg0, %c0_i32_0 : i32, i32, i32
  }
  func.func @transform_6(%arg0: i32) -> (i32, i32, i32) {
    %c0_i32 = arith.constant 0 : i32
    %c0_i32_0 = arith.constant 0 : i32
    %c0_i32_1 = arith.constant 0 : i32
    return %c0_i32, %arg0, %c0_i32_0 : i32, i32, i32
  }
}

</mosaic_0001>

<bundles_post_ra>
// kernel: edge_embedding_forward.1
= control target key start
LH: loop header
LB: loop body
LE: loop exit
PB: predicated region body
PF: predicated region fallthrough
CT: control target
= control target key end

     0   :  { %s3436_s0 = inlined_call_operand.vmem [shape: f32[3,32,128], index: 0, kind: input, shape index: {}]   ;;  %s3437_s1 = inlined_call_operand.vmem [shape: s32[32,128], index: 1, kind: input, shape index: {}]   ;;  %s3438_s2 = inlined_call_operand.vmem [shape: f32[18], index: 2, kind: input, shape index: {}]   ;;  %s3439_s3 = inlined_call_operand.vmem [shape: f32[32,128], index: 3, kind: output, shape index: {0}]   ;;  %s3440_s4 = inlined_call_operand.vmem [shape: f32[8,32,128], index: 4, kind: output, shape index: {1}]   ;;  %s3441_s5 = inlined_call_operand.vmem [shape: f32[9,32,128], index: 5, kind: output, shape index: {2}]   ;;  %s3442_s6 = inlined_call_operand.vmem [shape: f32[24,32,128], index: 6, kind: output, shape index: {3}]  }
   0x1   :  { %3444 = sst [smem:[#allocation11_spill]] %s3436_s0 }
   0x2   :  { %3445 = sst [smem:[#allocation12_spill]] %s3437_s1 }
   0x3   :  { %3446 = sst [smem:[#allocation13_spill]] %s3438_s2 }
   0x4   :  { %12 = vsyncpa [#allocation4], 0  ;;  %s2321_s21 = smov 0   ;;  %s2323_s22 = smov 0  }
   0x5   :  { %s2325_s23 = smov 0  }
   0x6 LB: > { %3447 = sst [smem:[#allocation9_spill]] %s2272_s22  ;;  %s2337_s24 = sadd.s32 4294967295, %s2276_s23   ;;  %s2276_s23 = sphi %s2325_s23, %s3464_s23   ;;  %s2272_s22 = sphi %s2323_s22, %s3463_s22   ;;  %s2268_s21 = sphi %s2321_s21, %s3462_s21  }
   0x7   : > { %s2340_s25 = sadd.s32 1, %s2276_s23   ;;  %s25_s27 = sadd.s32 1, %s2272_s22 }
   0x8   : > { %s22_s26 = ssub.s32 %s2276_s23, %s2340_s25  ;;  %p32_p1 = scmp.ne.s32.totalorder %s2272_s22, %s2268_s21 }
   0x9   : > { %p23_p0 = scmp.eq.s32.totalorder %s22_s26, 0  ;;  %p33_p2 = scmp.eq.s32.totalorder %s2276_s23, 0 }
   0xa   : > { %p135_p3 = scmp.eq.s32.totalorder %s2337_s24, 1  ;;  %p1995_p6 = scmp.ge.s32.totalorder %s2276_s23, 1 }
   0xb   : > { %s2350_s28 = scalar_select %p23_p0, %s2272_s22, %s25_s27  }
   0xc   : > { %p2352_p4 = por %p33_p2, %p32_p1  ;;  %p2356_p5 = por %p135_p3, %p32_p1 }
   0xd   : > { %3448 = sst [smem:[#allocation10_spill]] %s2350_s28  ;;  %p200_p7 = scmp.lt.s32.totalorder %s2276_s23, 3 }
   0xe   : > { %s3450_s30 = scalar_select %p2356_p5, 1, 0 }
   0xf   : > { %p2153_p8 = scmp.eq.s32.totalorder %s2337_s24, 0  ;;  %p2363_p9 = pnand %p1995_p6, %p200_p7 }
  0x10   : > { %s3452_s2 = sld [smem:[#allocation13_spill]] }
  0x11   : > { %p2149_p10 = pneg %p2363_p9 }
  0x13   : > { %p2150_p11 = pnand %p2153_p8, %p2149_p10 }
  0x15   : > { %p2237_p13 = pneg %p2150_p11 }
  0x16   : > { %s213_s10 = sshll.u32 %s3452_s2, 4  ;;  %s214_s10 = int_to_ptr.vmem [resolvable:$true] %s213_s10 }
  0x17   : > { %s2235_s11 = scalar_lea.vmem %s214_s10, 16  ;;  %p2243_p2 = scmp.lt.s32.totalorder %s214_s10, %s214_s10 }
  0x18   : > { %p2236_p12 = scmp.ne.s32.totalorder %s214_s10, %s2235_s11  ;;  %p2244_p3 = scmp.lt.s32.totalorder %s2235_s11, %s2235_s11 }
  0x1a   : > { %p2238_p0 = pnand %p2237_p13, %p2236_p12  ;;  %p2245_p6 = por %p2244_p3, %p2243_p2 }
  0x1c   : > { %p2239_p1 = pneg %p2238_p0 }
  0x1e   : > { %p2246_p7 = pnand %p2245_p6, %p2239_p1 }
  0x20   : > { %2249 = shalt.err (!%p2246_p7)
}
  0x21   : > { %s2278_s12 = smov [#allocation3]   ;;  %p1997_p5 = scmp.ge.s32.totalorder %s2276_s23, 2 }
  0x22   : > { %2152 = dma.vmem_to_smem (!%p2150_p11), %s214_s10, 16, %s2278_s12, [#allocation4]  }
  0x23   : > { %220 = sbr.rel (%p1997_p5) target bundleno = 53 (0x35), region = 20 }
  0x28   : > { %223 = sbr.rel (!%p2352_p4) target bundleno = 53 (0x35), region = 24  ;;  %s225_s13 = sand.u32 (%p2352_p4), 1, %s2272_s22  }
  0x29   : > { %s2129_s14 = sshll.u32 (%p2352_p4), %s2276_s23, 4  ;;  %s2133_s15 = smul.u32 (%p2352_p4), 48, %s225_s13 }
  0x2a   : > { %s3453_s0 = sld [smem:[#allocation11_spill]] (%p2352_p4) }
  0x2b   : > { %s227_s19 = scalar_lea.vmem (%p2352_p4), [#allocation2], %s2133_s15 }
  0x30   : > { %s230_s18 = scalar_lea.vmem %s3453_s0, %s2129_s14 }
  0x31   : > { %v269_v0 = vld [vmem:[%s230_s18] sm:$0xff]  ;;  %v271_v1 = vld [vmem:[%s230_s18 + $0x8] sm:$0xff] }
  0x32   : > { %v273_v2 = vld [vmem:[%s230_s18 + $0x20] sm:$0xff]  ;;  %v275_v3 = vld [vmem:[%s230_s18 + $0x28] sm:$0xff]  ;;  %270 = vst [vmem:[%s227_s19] sm:$0xff] %v269_v0  ;;  %272 = vst [vmem:[%s227_s19 + $0x8] sm:$0xff] %v271_v1 }
  0x33   : > { %v277_v4 = vld [vmem:[%s230_s18 + $0x40] sm:$0xff]  ;;  %v279_v5 = vld [vmem:[%s230_s18 + $0x48] sm:$0xff]  ;;  %274 = vst [vmem:[%s227_s19 + $0x10] sm:$0xff] %v273_v2  ;;  %276 = vst [vmem:[%s227_s19 + $0x18] sm:$0xff] %v275_v3 }
  0x34   : > { %278 = vst [vmem:[%s227_s19 + $0x20] sm:$0xff] %v277_v4  ;;  %280 = vst [vmem:[%s227_s19 + $0x28] sm:$0xff] %v279_v5 }
  0x35 PF: > { %298 = sbr.rel (%p2363_p9) target bundleno = 307 (0x133), region = 66  ;;  %s2385_s20 = sand.u32 (!%p2363_p9), 1, %s2268_s21  }
  0x36   : > { %s2134_s23 = smul.u32 (!%p2363_p9), 48, %s2385_s20 }
  0x38   : > { %s303_s26 = scalar_lea.vmem (!%p2363_p9), [#allocation2], %s2134_s23 }
  0x3a   : > { %2263 = dma.done.wait (%p2153_p8), [#allocation4], 16  }
  0x3b   : > { %2265 = vsyncadd (%p2153_p8), [#allocation4], 4294967280 }
  0x3c   : > { %311 = sfence }
  0x3d   : > { %s2003_s27 = sshll.u32 %s2337_s24, 1  ;;  %v368_v6 = vld [vmem:[%s303_s26] sm:$0xff]  ;;  %v2007_v7 = vld [vmem:[%s303_s26 + $0x10] sm:$0xff]  ;;  %s2397_s21 = sld [smem:[#allocation3]]  ;;  %v2399_v12 = vld [vmem:[%s303_s26 + $0x8] sm:$0xff] }
  0x3e   : > { %v2393_v8 = vld [vmem:[%s303_s26 + $0x20] sm:$0xff]  ;;  %p354_p4 = scmp.lt.s32.totalorder %s2003_s27, 3  ;;  %v376_v9 = vmul.f32 %v368_v6, %v368_v6  ;;  %v378_v10 = vmul.f32 %v2007_v7, %v2007_v7  ;;  %v2401_v13 = vld [vmem:[%s303_s26 + $0x18] sm:$0xff]  ;;  %s2403_s29 = sld [smem:[#allocation3 + $0x1]]  ;;  %v377_v15 = vmul.f32 %v2399_v12, %v2399_v12  ;;  %v2415_v18 = vld [vmem:[%s303_s26 + $0x28] sm:$0xff] }
  0x3f   : > { %v382_v11 = vmul.f32 %v2393_v8, %v2393_v8  ;;  %s2405_s7 = sld [smem:[#allocation3 + $0x2]]  ;;  %v379_v16 = vmul.f32 %v2401_v13, %v2401_v13  ;;  %v383_v20 = vmul.f32 %v2415_v18, %v2415_v18  ;;  %s2136_s2 = smul.u32 384, %s2385_s20 }
  0x40   : > { %v380_v14 = vadd.f32 %v378_v10, %v376_v9  ;;  %s3466_s27 = smov (!%p354_p4, %s2003_s27), 3  ;;  %s2413_s8 = sld [smem:[#allocation3 + $0x3]] }
  0x41   : > { %s2417_s9 = sld [smem:[#allocation3 + $0x4]]  ;;  %v381_v19 = vadd.f32 %v379_v16, %v377_v15  ;;  %s2004_s13 = sshll.u32 %s3466_s27, 3 }
  0x42   : > { %v384_v17 = vadd.f32 %v382_v11, %v380_v14  ;;  %s2419_s10 = sld [smem:[#allocation3 + $0x5]]  ;;  %s2464_s22 = scalar_lea.vmem %s3439_s3, %s2004_s13 }
  0x43   : > { %s2421_s11 = sld [smem:[#allocation3 + $0x6]]  ;;  %v2434_v21 = vadd.f32 %v383_v20, %v381_v19  ;;  %v1000_v24 = vstv %s2397_s21  ;;  %s2002_s28 = sshll.u32 %s2385_s20, 7 }
  0x44   : > { %2187 = vrsqrt.f32 %v384_v17  ;;  %s2425_s12 = sld [smem:[#allocation3 + $0x7]]  ;;  %v1005_v27 = vstv %s2403_s29  ;;  %s3101_s21 = scalar_lea.vmem [#allocation5], %s2002_s28 }
  0x45   : > { %s2428_s14 = sld [smem:[#allocation3 + $0x8]]  ;;  %2189 = vrsqrt.f32 %v2434_v21  ;;  %v1010_v29 = vstv %s2405_s7  ;;  %p3459_p5 = scmp.ne.s32.totalorder %s3450_s30, 0 }
  0x46   : > { %s2430_s15 = sld [smem:[#allocation3 + $0x9]]  ;;  %v1015_v30 = vstv %s2413_s8 }
  0x47   : > { %s2432_s16 = sld [smem:[#allocation3 + $0xa]]  ;;  %v1020_v31 = vstv %s2417_s9 }
  0x48   : > { %s3454_s1 = sld [smem:[#allocation12_spill]]  ;;  %v1025_v33 = vstv %s2419_s10 }
  0x49   : > { %s2441_s23 = sld [smem:[#allocation3 + $0xb]]  ;;  %v1030_v34 = vstv %s2421_s11 }
  0x4a   : > { %s2443_s26 = sld [smem:[#allocation3 + $0xc]]  ;;  %v1035_v35 = vstv %s2425_s12 }
  0x4b   : > { %s2445_s27 = sld [smem:[#allocation3 + $0xd]]  ;;  %v1040_v52 = vstv %s2428_s14 }
  0x4c   : > { %s2448_s0 = sld [smem:[#allocation3 + $0xe]]  ;;  %v999_v23 = vstv %s2430_s15 }
  0x4d   : > { %s2451_s17 = sld [smem:[#allocation3 + $0xf]]  ;;  %v1004_v26 = vstv %s2432_s16 }
  0x4e   : > { %s2439_s19 = scalar_lea.vmem %s3454_s1, %s2004_s13  ;;  %s2453_s18 = sld [smem:[#allocation3 + $0x10]] }
  0x4f   : > { %v985_v22 = vld [vmem:[%s2439_s19] sm:$0xff]  ;;  %s2457_s1 = sld [smem:[#allocation3 + $0x11]]  ;;  %v1009_v38 = vstv %s2441_s23  ;;  %v2500_v49 = vld [vmem:[%s2439_s19 + $0x8] sm:$0xff] }
  0x50   : > { %vm996_vm0 = vcmp.eq.s32.totalorder %v985_v22, 1  ;;  %v1014_v39 = vstv %s2443_s26  ;;  %vm997_vm1 = vcmp.eq.s32.totalorder %v2500_v49, 1 }
  0x51   : > { %v2459_v25 = vpop.eup %2187  ;;  %v1001_v32 = vsel %vm996_vm0, %v999_v23, %v1000_v24  ;;  %v1006_v37 = vsel %vm996_vm0, %v1004_v26, %v1005_v27  ;;  %v1019_v42 = vstv %s2445_s27  ;;  %v1011_v50 = vsel %vm996_vm0, %v1009_v38, %v1010_v29 }
  0x52   : > { %v388_v28 = vmul.f32 %v2459_v25, %v384_v17  ;;  %v2483_v40 = vmul.f32 %v2459_v25, %v368_v6  ;;  %v2486_v41 = vmul.f32 %v2459_v25, %v2007_v7  ;;  %v1024_v43 = vstv %s2448_s0  ;;  %v2528_v61 = vpop.eup %2189  ;;  %s2135_s0 = smul.u32 144, %s2385_s20  ;;  %s2130_s20 = sshll.u32 (%p3459_p5), %s2337_s24, 4 }
  0x53   : > { %v2493_v45 = vmul.f32 %v2459_v25, %v2393_v8  ;;  %v1029_v46 = vstv %s2451_s17  ;;  %v1016_v51 = vsel %vm996_vm0, %v1014_v39, %v1015_v30  ;;  %v1021_v54 = vsel %vm996_vm0, %v1019_v42, %v1020_v31  ;;  %s1404_s8 = scalar_lea.vmem (%p3459_p5), %s3440_s4, %s2130_s20 }
  0x54   : > { %390 = vst [vmem:[%s2464_s22] sm:$0xff] %v388_v28  ;;  %v2477_v36 = vmul.f32 0.62831855, %v388_v28  ;;  %v1034_v47 = vstv %s2453_s18  ;;  %v2497_v48 = vmul.f32 0.2, %v388_v28  ;;  %v1026_v55 = vsel %vm996_vm0, %v1024_v43, %v1025_v33 }
  0x55   : > { %v1039_v56 = vstv %s2457_s1  ;;  %v1031_v57 = vsel %vm996_vm0, %v1029_v46, %v1030_v34  ;;  %v1036_v58 = vsel %vm996_vm0, %v1034_v47, %v1035_v35  ;;  %v1043_v59 = vmul.f32 %v1001_v32, %v2483_v40  ;;  %s2876_s1 = scalar_lea.vmem [#allocation6], %s2135_s0 }
  0x56   : > { %v421_v44 = vand.u32 2139095040, %v2477_v36  ;;  %v1045_v60 = vmul.f32 %v1006_v37, %v2486_v41  ;;  %v1041_v63 = vsel %vm996_vm0, %v1039_v56, %v1040_v52  ;;  %v1049_v0 = vmul.f32 %v1011_v50, %v2493_v45 }
  0x57   : > { %v1154_v2 = vmul.f32 %v1016_v51, %v2483_v40  ;;  %v1156_v3 = vmul.f32 %v1021_v54, %v2486_v41  ;;  %v1160_v4 = vmul.f32 %v1026_v55, %v2493_v45  ;;  %v400_v5 = vmul.f32 21.0, %v2497_v48 }
  0x58   : > { %v422_v53 = vshrl.u32 %v421_v44, 23  ;;  %v1047_v1 = vadd.f32 %v1045_v60, %v1043_v59  ;;  %v1266_v6 = vmul.f32 %v1031_v57, %v2483_v40  ;;  %v1268_v7 = vmul.f32 %v1036_v58, %v2486_v41 }
  0x59   : > { %v1158_v9 = vadd.f32 %v1156_v3, %v1154_v2  ;;  %v1272_v10 = vmul.f32 %v1041_v63, %v2493_v45  ;;  %v389_v11 = vmul.f32 %v2528_v61, %v2434_v21  ;;  %v1002_v14 = vsel %vm997_vm1, %v999_v23, %v1000_v24 }
  0x5a   : > { %v2011_v62 = vadd.s32 4294967169, %v422_v53  ;;  %v1051_v8 = vadd.f32 %v1049_v0, %v1047_v1  ;;  %v1270_v15 = vadd.f32 %v1268_v7, %v1266_v6  ;;  %v1007_v17 = vsel %vm997_vm1, %v1004_v26, %v1005_v27 }
  0x5b   : > { %v1162_v20 = vadd.f32 %v1160_v4, %v1158_v9  ;;  %391 = vst [vmem:[%s2464_s22 + $0x8] sm:$0xff] %v389_v11  ;;  %v1012_v22 = vsel %vm997_vm1, %v1009_v38, %v1010_v29  ;;  %v2553_v32 = vmul.f32 0.2, %v389_v11  ;;  %v2555_v21 = vmul.f32 0.62831855, %v389_v11  ;;  %s2955_s22 = scalar_lea.vmem [#allocation7], %s2136_s2 }
  0x5c   : > { %v428_v16 = vadd.s32 1, %v2011_v62  ;;  %v1053_v19 = vmul.f32 %v1051_v8, %v1051_v8  ;;  %v1274_v28 = vadd.f32 %v1272_v10, %v1270_v15  ;;  %v394_v23 = vmul.f32 %v2497_v48, %v2497_v48 }
  0x5d   : > { %v402_v24 = vsub.f32 48.0, %v400_v5  ;;  %v1164_v44 = vmul.f32 %v1162_v20, %v1162_v20  ;;  %v1017_v26 = vsel %vm997_vm1, %v1014_v39, %v1015_v30  ;;  %v1022_v27 = vsel %vm997_vm1, %v1019_v42, %v1020_v31 }
  0x5e   : > { %v1055_v37 = vsub.f32 1.0, %v1053_v19  ;;  %v1276_v29 = vmul.f32 %v1274_v28, %v1274_v28  ;;  %v525_v38 = vand.u32 2139095040, %v2555_v21  ;;  %vm429_vm2 = vcmp.gt.s32.totalorder %v428_v16, 0 }
  0x5f   : > { %v1166_v51 = vsub.f32 1.0, %v1164_v44  ;;  %v2572_v53 = vmul.f32 %v2528_v61, %v2399_v12  ;;  %v401_v39 = vmul.f32 21.0, %v2553_v32  ;;  %v2577_v54 = vmul.f32 %v2528_v61, %v2401_v13 }
  0x60   : > { %v2568_v50 = vmax.f32 %v1055_v37, 0.0  ;;  %v1278_v30 = vsub.f32 1.0, %v1276_v29  ;;  %v2581_v31 = vmul.f32 %v2528_v61, %v2415_v18  ;;  %v396_v42 = vmul.f32 %v394_v23, %v394_v23 }
  0x61   : > { %v404_v55 = vmul.f32 %v402_v24, %v2497_v48  ;;  %v1027_v12 = vsel %vm997_vm1, %v1024_v43, %v1025_v33  ;;  %v1032_v13 = vsel %vm997_vm1, %v1029_v46, %v1030_v34  ;;  %v2597_v57 = vmax.f32 %v1166_v51, 0.0 }
  0x62   : > { %2191 = vrsqrt.f32 %v2568_v50  ;;  %v2599_v18 = vmax.f32 %v1278_v30, 0.0  ;;  %v526_v58 = vshrl.u32 %v525_v38, 23  ;;  %v430_v59 = vsel %vm429_vm2, %v428_v16, 0 }
  0x63   : > { %v1037_v33 = vsel %vm997_vm1, %v1034_v47, %v1035_v35  ;;  %v1044_v43 = vmul.f32 %v1002_v14, %v2572_v53  ;;  %v1046_v60 = vmul.f32 %v1007_v17, %v2577_v54  ;;  %2193 = vrsqrt.f32 %v2597_v57 }
  0x64   : > { %v395_v34 = vmul.f32 %v2553_v32, %v2553_v32  ;;  %v403_v46 = vsub.f32 48.0, %v401_v39  ;;  %v1050_v62 = vmul.f32 %v1012_v22, %v2581_v31  ;;  %v398_v63 = vmul.f32 %v396_v42, %v394_v23 }
  0x65   : > { %v406_v0 = vadd.f32 -28.0, %v404_v55  ;;  %v1042_v1 = vsel %vm997_vm1, %v1039_v56, %v1040_v52  ;;  %2195 = vrsqrt.f32 %v2599_v18  ;;  %v2621_v35 = vand.u32 31, %v430_v59 }
  0x66   : > { %v2015_v47 = vadd.s32 4294967169, %v526_v58  ;;  %v1048_v2 = vadd.f32 %v1046_v60, %v1044_v43  ;;  %v1155_v3 = vmul.f32 %v1017_v26, %v2572_v53  ;;  %v1157_v4 = vmul.f32 %v1022_v27, %v2577_v54 }
  0x67   : > { %v1161_v5 = vmul.f32 %v1027_v12, %v2581_v31  ;;  %v1267_v6 = vmul.f32 %v1032_v13, %v2572_v53  ;;  %v1269_v7 = vmul.f32 %v1037_v33, %v2577_v54  ;;  %v397_v8 = vmul.f32 %v395_v34, %v395_v34 }
  0x68   : > { %v405_v49 = vmul.f32 %v403_v46, %v2553_v32  ;;  %v1052_v52 = vadd.f32 %v1050_v62, %v1048_v2  ;;  %v1273_v56 = vmul.f32 %v1042_v1, %v2581_v31  ;;  %v1159_v9 = vadd.f32 %v1157_v4, %v1155_v3 }
  0x69   : > { %v1271_v10 = vadd.f32 %v1269_v7, %v1267_v6  ;;  %v408_v11 = vmul.f32 %v406_v0, %v398_v63  ;;  %v2630_v14 = vshrl.u32 %v430_v59, 5  ;;  %v532_v15 = vadd.s32 1, %v2015_v47 }
  0x6a   : > { %v1054_v16 = vmul.f32 %v1052_v52, %v1052_v52  ;;  %v2633_v17 = vsub.s32 32, %v2621_v35  ;;  %vm1061_vm3 = vcmp.eq.f32.partialorder %v2568_v50, inf  ;;  %v1163_v19 = vadd.f32 %v1161_v5, %v1159_v9 }
  0x6b   : > { %v1275_v20 = vadd.f32 %v1273_v56, %v1271_v10  ;;  %vm1063_vm4 = vcmp.eq.f32.partialorder %v2568_v50, 0.0  ;;  %v399_v22 = vmul.f32 %v397_v8, %v395_v34  ;;  %v407_v28 = vadd.f32 -28.0, %v405_v49 }
  0x6c   : > { %v1056_v23 = vsub.f32 1.0, %v1054_v16  ;;  %v1064_v24 = vand.u32 2147483648, %v2568_v50  ;;  %vm1172_vm5 = vcmp.eq.f32.partialorder %v2597_v57, inf  ;;  %vm1174_vm6 = vcmp.eq.f32.partialorder %v2597_v57, 0.0 }
  0x6d   : > { %v1165_v37 = vmul.f32 %v1163_v19, %v1163_v19  ;;  %vm533_vm7 = vcmp.gt.s32.totalorder %v532_v15, 0  ;;  %v1277_v27 = vmul.f32 %v1275_v20, %v1275_v20  ;;  %v418_v29 = vand.u32 2147483647, %v2477_v36 }
  0x6e   : > { %v2640_v26 = vmax.f32 %v1056_v23, 0.0  ;;  %v1175_v51 = vand.u32 2147483648, %v2597_v57  ;;  %vm1284_vm8 = vcmp.eq.f32.partialorder %v2599_v18, inf  ;;  %vm1286_vm9 = vcmp.eq.f32.partialorder %v2599_v18, 0.0 }
  0x6f   : > { %v2192_v44 = vpop.eup %2191  ;;  %v1167_v30 = vsub.f32 1.0, %v1165_v37  ;;  %v1287_v39 = vand.u32 2147483648, %v2599_v18  ;;  %v2648_v42 = vmul.f32 %v407_v28, %v399_v22  ;;  %v2654_v13 = vsel %vm533_vm7, %v532_v15, 0 }
  0x70   : > { %v1060_v38 = vmul.f32 %v2192_v44, %v2568_v50  ;;  %2197 = vrsqrt.f32 %v2640_v26  ;;  %v2194_v55 = vpop.eup %2193  ;;  %v2658_v59 = vadd.f32 1.0, %v408_v11  ;;  %v1279_v34 = vsub.f32 1.0, %v1277_v27 }
  0x71   : > { %v2656_v58 = vmax.f32 %v1167_v30, 0.0  ;;  %v1171_v60 = vmul.f32 %v2194_v55, %v2597_v57  ;;  %v2665_v46 = vand.u32 8388607, %v418_v29  ;;  %v2280_v3 = vmov 2475754826  }
  0x72   : > { %v1062_v12 = vsel %vm1061_vm3, %v2568_v50, %v1060_v38  ;;  %v2196_v33 = vpop.eup %2195  ;;  %v2279_v50 = vmov 683565275   ;;  %v436_v4 = vshrl.u32 %v2280_v3, %v2633_v17  ;;  %v2677_v5 = vshrl.u32 %v2654_v13, 5 }
  0x73   : > { %v1065_v43 = vsel %vm1063_vm4, %v1064_v24, %v1062_v12  ;;  %v1283_v1 = vmul.f32 %v2196_v33, %v2599_v18  ;;  %v1173_v47 = vsel %vm1172_vm5, %v2597_v57, %v1171_v60  ;;  %2199 = vrsqrt.f32 %v2656_v58 }
  0x74   : > { %v1073_v62 = vmul.f32 -12.25, %v1065_v43  ;;  %v1075_v63 = vadd.f32 2.0, %v1065_v43  ;;  %v1083_v0 = vmul.f32 7.0, %v1065_v43  ;;  %v435_v2 = vshll.u32 %v2279_v50, %v2621_v35 }
  0x75   : > { %v2681_v6 = vshrl.u32 %v2279_v50, %v2633_v17  ;;  %v438_v7 = vshll.u32 %v2280_v3, %v2621_v35  ;;  %v2281_v8 = vmov 2131351028   ;;  %v1176_v9 = vsel %vm1174_vm6, %v1175_v51, %v1173_v47 }
  0x76   : > { %v439_v49 = vshrl.u32 %v2281_v8, %v2633_v17  ;;  %v1077_v52 = vmul.f32 %v1075_v63, %v1073_v62  ;;  %v1085_v56 = vmul.f32 1.442695, %v1083_v0  ;;  %v1285_v10 = vsel %vm1284_vm8, %v2599_v18, %v1283_v1 }
  0x77   : > { %vm1068_vm10 = vcmp.eq.f32.partialorder %v2640_v26, inf  ;;  %vm1070_vm11 = vcmp.eq.f32.partialorder %v2640_v26, 0.0  ;;  %v2694_v11 = vmax.f32 %v1279_v34, 0.0  ;;  %v426_v15 = vor.u32 8388608, %v2665_v46 }
  0x78   : > { %v1184_v16 = vmul.f32 -12.25, %v1176_v9  ;;  %v1186_v19 = vadd.f32 2.0, %v1176_v9  ;;  %v1071_v20 = vand.u32 2147483648, %v2640_v26  ;;  %v437_v22 = vor.u32 %v436_v4, %v435_v2 }
  0x79   : > { %v1194_v28 = vmul.f32 7.0, %v1176_v9  ;;  %v1288_v57 = vsel %vm1286_vm9, %v1287_v39, %v1285_v10  ;;  %v440_v23 = vor.u32 %v439_v49, %v438_v7  ;;  %v441_v24 = vshll.u32 %v2281_v8, %v2621_v35 }
  0x7a   : > { %v1079_v37 = vmul.f32 1.442695, %v1077_v52  ;;  %2201 = vpow2.f32 %v1085_v56  ;;  %v1296_v44 = vmul.f32 -12.25, %v1288_v57  ;;  %vm1179_vm12 = vcmp.eq.f32.partialorder %v2656_v58, inf }
  0x7b   : > { %vm412_vm13 = vcmp.lt.f32.partialorder %v2497_v48, 1.0  ;;  %v1298_v27 = vadd.f32 2.0, %v1288_v57  ;;  %2203 = vrsqrt.f32 %v2694_v11  ;;  %v2282_v38 = vmov 2102212464  }
  0x7c   : > { %v442_v51 = vshrl.u32 %v2282_v38, %v2633_v17  ;;  %v444_v18 = vshll.u32 %v2282_v38, %v2621_v35  ;;  %v1188_v30 = vmul.f32 %v1186_v19, %v1184_v16  ;;  %v2283_v39 = vmov 920167782  }
  0x7d   : > { %v445_v55 = vshrl.u32 %v2283_v39, %v2633_v17  ;;  %v447_v12 = vshll.u32 %v2283_v39, %v2621_v35  ;;  %v2284_v33 = vmov 1326507024   ;;  %v2198_v60 = vpop.eup %2197  ;;  %v1196_v34 = vmul.f32 1.442695, %v1194_v28 }
  0x7e   : > { %v448_v43 = vshrl.u32 %v2284_v33, %v2633_v17  ;;  %v1306_v46 = vmul.f32 7.0, %v1288_v57  ;;  %vm1181_vm14 = vcmp.eq.f32.partialorder %v2656_v58, 0.0  ;;  %v443_v62 = vor.u32 %v442_v51, %v441_v24 }
  0x7f   : > { %vm450_vm15 = vcmp.lt.s32.totalorder %v2630_v14, 1  ;;  %v1067_v63 = vmul.f32 %v2198_v60, %v2640_v26  ;;  %v1182_v0 = vand.u32 2147483648, %v2656_v58  ;;  %v446_v1 = vor.u32 %v445_v55, %v444_v18 }
  0x80   : > { %v449_v47 = vor.u32 %v448_v43, %v447_v12  ;;  %2205 = vpow2.f32 %v1079_v37  ;;  %vm451_vm0 = vcmp.lt.s32.totalorder %v2630_v14, 2  ;;  %vm452_vm1 = vcmp.lt.s32.totalorder %v2630_v14, 3  ;;  %v2200_v7 = vpop.eup %2199 }
  0x81   : > { %vm453_vm2 = vcmp.lt.s32.totalorder %v2630_v14, 4  ;;  %v1069_v35 = vsel %vm1068_vm10, %v2640_v26, %v1067_v63  ;;  %v458_v2 = vsel %vm450_vm15, %v437_v22, %v440_v23  ;;  %v462_v56 = vsel %vm450_vm15, %v440_v23, %v443_v62 }
  0x82   : > { %v455_v17 = vsel %vm453_vm2, %v443_v62, 2102212464  ;;  %v459_v4 = vsel %vm453_vm2, %v446_v1, 920167782  ;;  %v1072_v49 = vsel %vm1070_vm11, %v1071_v20, %v1069_v35  ;;  %v463_v9 = vsel %vm453_vm2, %v449_v47, 1326507024 }
  0x83   : > { %v460_v52 = vsel %vm452_vm1, %v443_v62, %v459_v4  ;;  %v1300_v10 = vmul.f32 %v1298_v27, %v1296_v44  ;;  %v1074_v16 = vmul.f32 -12.25, %v1072_v49  ;;  %v1076_v19 = vadd.f32 2.0, %v1072_v49 }
  0x84   : > { %v1178_v28 = vmul.f32 %v2200_v7, %v2656_v58  ;;  %v1190_v57 = vmul.f32 1.442695, %v1188_v30  ;;  %v454_v24 = vsel %vm450_vm15, %v2681_v6, %v437_v22  ;;  %v464_v26 = vsel %vm452_vm1, %v446_v1, %v463_v9 }
  0x85   : > { %v466_v20 = vshll.u32 %v426_v15, 8  ;;  %v1084_v37 = vmul.f32 7.0, %v1072_v49  ;;  %v456_v51 = vsel %vm452_vm1, %v440_v23, %v455_v17  ;;  %v461_v44 = vsel %vm451_vm0, %v458_v2, %v460_v52 }
  0x86   : > { %v465_v27 = vsel %vm451_vm0, %v462_v56, %v464_v26  ;;  %v1078_v18 = vmul.f32 %v1076_v19, %v1074_v16  ;;  %v1180_v30 = vsel %vm1179_vm12, %v2656_v58, %v1178_v28  ;;  %2207 = vpow2.f32 %v1196_v34 }
  0x87   : > { %v2748_v6 = vmul.u32.u64.low %v466_v20, %v465_v27  ;;  %v2749_v22 = vmul.u32.u64.high %v466_v20, %v465_v27, %v2748_v6  ;;  %v1302_v15 = vmul.f32 1.442695, %v1300_v10  ;;  %v536_v55 = vand.u32 31, %v2654_v13  ;;  %v2757_v12 = vpop.eup %2201 }
  0x88   : > { %v2755_v23 = vsel %vm412_vm13, %v2658_v59, 0.0  ;;  %v1308_v43 = vmul.f32 1.442695, %v1306_v46  ;;  %v457_v60 = vsel %vm451_vm0, %v454_v24, %v456_v51  ;;  %v2204_v1 = vpop.eup %2203  ;;  %2209 = vpow2.f32 %v1190_v57 }
  0x89   : > { %v2761_v62 = vmul.u32.u64.low %v466_v20, %v461_v44  ;;  %v2762_v63 = vmul.u32.u64.high %v466_v20, %v461_v44, %v2761_v62  ;;  %v1087_v34 = vmul.f32 1.442695, %v1084_v37  ;;  %v1183_v13 = vsel %vm1181_vm14, %v1182_v0, %v1180_v30 }
  0x8a   : > { %vm1291_vm3 = vcmp.eq.f32.partialorder %v2694_v11, inf  ;;  %v1081_v48 = vmul.f32 1.442695, %v1078_v18  ;;  %v1185_v59 = vmul.f32 -12.25, %v1183_v13  ;;  %v1187_v47 = vadd.f32 2.0, %v1183_v13 }
  0x8b   : > { %v1290_v46 = vmul.f32 %v2204_v1, %v2694_v11  ;;  %2211 = vpow2.f32 %v1302_v15  ;;  %v537_v14 = vsub.s32 32, %v536_v55  ;;  %v473_v35 = vmul.u32 %v466_v20, %v457_v60 }
  0x8c   : > { %vm475_vm4 = vc.u32 %v2749_v22, %v2761_v62  ;;  %2213 = vpow2.f32 %v1308_v43  ;;  %v1195_v17 = vmul.f32 7.0, %v1183_v13  ;;  %v1294_v2 = vand.u32 2147483648, %v2694_v11 }
  0x8d   : > { %v476_v58 = vadd.s32 1, %v2762_v63  ;;  %v2773_v0 = vpop.eup %2205  ;;  %2215 = vpow2.f32 %v1087_v34  ;;  %v1292_v4 = vsel %vm1291_vm3, %v2694_v11, %v1290_v46  ;;  %vm1293_vm5 = vcmp.eq.f32.partialorder %v2694_v11, 0.0 }
  0x8e   : > { %v522_v7 = vand.u32 2147483647, %v2555_v21  ;;  %2217 = vpow2.f32 %v1081_v48  ;;  %v1189_v49 = vmul.f32 %v1187_v47, %v1185_v59  ;;  %v2782_v56 = vmul.f32 0.4, %v2459_v25 }
  0x8f   : > { %v477_v52 = vsel %vm475_vm4, %v476_v58, %v2762_v63  ;;  %vm413_vm6 = vcmp.lt.f32.partialorder %v2553_v32, 1.0  ;;  %v411_v10 = vadd.f32 1.0, %v2648_v42  ;;  %v539_v16 = vshll.u32 %v2279_v50, %v536_v55 }
  0x90   : > { %v478_v9 = vadd.s32 %v477_v52, %v473_v35  ;;  %v540_v19 = vshrl.u32 %v2280_v3, %v537_v14  ;;  %v1198_v28 = vmul.f32 1.442695, %v1195_v17  ;;  %v1295_v11 = vsel %vm1293_vm5, %v1294_v2, %v1292_v4 }
  0x91   : > { %v542_v57 = vshll.u32 %v2280_v3, %v536_v55  ;;  %v543_v24 = vshrl.u32 %v2281_v8, %v537_v14  ;;  %v529_v25 = vand.u32 8388607, %v522_v7  ;;  %v545_v20 = vshll.u32 %v2281_v8, %v536_v55 }
  0x92   : > { %v479_v26 = vadd.s32 536870912, %v478_v9  ;;  %v546_v37 = vshrl.u32 %v2282_v38, %v537_v14  ;;  %v1297_v51 = vmul.f32 -12.25, %v1295_v11  ;;  %vm420_vm7 = vcmp.lt.s32.totalorder %v2477_v36, 0 }
  0x93   : > { %v538_v42 = vshrl.u32 %v2279_v50, %v537_v14  ;;  %v541_v44 = vor.u32 %v540_v19, %v539_v16  ;;  %v548_v27 = vshll.u32 %v2282_v38, %v536_v55  ;;  %v544_v3 = vor.u32 %v543_v24, %v542_v57  ;;  %v2799_v15 = vpop.eup %2207 }
  0x94   : > { %v480_v18 = vshrl.u32 %v479_v26, 30  ;;  %v549_v30 = vshrl.u32 %v2283_v39, %v537_v14  ;;  %v551_v6 = vshll.u32 %v2283_v39, %v536_v55  ;;  %v1299_v43 = vadd.f32 2.0, %v1295_v11 }
  0x95   : > { %v547_v8 = vor.u32 %v546_v37, %v545_v20  ;;  %v552_v60 = vshrl.u32 %v2284_v33, %v537_v14  ;;  %vm554_vm8 = vcmp.lt.s32.totalorder %v2677_v5, 1  ;;  %vm2805_vm9 = vcmp.le.f32.partialorder %v418_v29, 0.7853982  ;;  %v2810_v39 = vpop.eup %2209 }
  0x96   : > { %v481_v38 = vshll.u32 %v480_v18, 30  ;;  %v530_v63 = vor.u32 8388608, %v529_v25  ;;  %v550_v1 = vor.u32 %v549_v30, %v548_v27  ;;  %vm556_vm10 = vcmp.lt.s32.totalorder %v2677_v5, 3 }
  0x97   : > { %v504_v55 = vsub.s32 4, %v480_v18  ;;  %v553_v34 = vor.u32 %v552_v60, %v551_v6  ;;  %vm555_vm11 = vcmp.lt.s32.totalorder %v2677_v5, 2  ;;  %vm557_vm12 = vcmp.lt.s32.totalorder %v2677_v5, 4 }
  0x98   : > { %v2814_v33 = vsub.s32 %v478_v9, %v481_v38  ;;  %v559_v29 = vsel %vm557_vm12, %v547_v8, 2102212464  ;;  %v562_v13 = vsel %vm554_vm8, %v541_v44, %v544_v3  ;;  %v563_v48 = vsel %vm557_vm12, %v550_v1, 920167782  ;;  %v2822_v59 = vpop.eup %2211 }
  0x99   : > { %v2826_v47 = vadd.s32 %v2761_v62, %v2749_v22  ;;  %v558_v46 = vsel %vm554_vm8, %v538_v42, %v541_v44  ;;  %v560_v14 = vsel %vm556_vm10, %v544_v3, %v559_v29  ;;  %v564_v35 = vsel %vm556_vm10, %v547_v8, %v563_v48  ;;  %v2835_v17 = vpop.eup %2213 }
  0x9a   : > { %v1192_v2 = vmul.f32 1.442695, %v1189_v49  ;;  %v1301_v58 = vmul.f32 %v1299_v43, %v1297_v51  ;;  %v1307_v4 = vmul.f32 7.0, %v1295_v11  ;;  %v484_v52 = vsub.s32 0, %v2814_v33  ;;  %v2838_v9 = vpop.eup %2215 }
  0x9b   : > { %v2842_v22 = vsel %vm413_vm6, %v411_v10, 0.0  ;;  %v565_v62 = vsel %vm555_vm11, %v562_v13, %v564_v35  ;;  %v567_v16 = vsel %vm557_vm12, %v553_v34, 1326507024  ;;  %v570_v19 = vshll.u32 %v530_v63, 8  ;;  %v2848_v57 = vpop.eup %2217 }
  0x9c   : > { %v2012_v49 = vmin.u32 %v484_v52, %v2814_v33  ;;  %v505_v11 = vsel %vm420_vm7, %v504_v55, %v480_v18  ;;  %v561_v24 = vsel %vm555_vm11, %v558_v46, %v560_v14  ;;  %v566_v32 = vsel %vm554_vm8, %v544_v3, %v547_v8 }
  0x9d   : > { %2219 = vpow2.f32 %v1198_v28  ;;  %v568_v10 = vsel %vm556_vm10, %v550_v1, %v567_v16  ;;  %v2859_v26 = vmul.u32.u64.low %v570_v19, %v565_v62  ;;  %v2860_v25 = vmul.u32.u64.high %v570_v19, %v565_v62, %v2859_v26 }
  0x9e   : > { %2221 = vpow2.f32 %v1192_v2  ;;  %v2863_v20 = vmul.f32 1.442695, %v1301_v58  ;;  %v2865_v37 = vmul.f32 1.442695, %v1307_v4  ;;  %v486_v51 = vclz %v2012_v49 }
  0x9f   : > { %v2869_v42 = vsel %vm2805_vm9, 0, %v505_v11  ;;  %v569_v28 = vsel %vm555_vm11, %v566_v32, %v568_v10  ;;  %v577_v44 = vmul.u32 %v570_v19, %v561_v24  ;;  %v2285_v30 = vmov 1.0  }
  0xa0   : > { %v2013_v27 = vadd.s32 4294967294, %v486_v51  ;;  %v2873_v18 = vmul.u32.u64.low %v570_v19, %v569_v28  ;;  %v2874_v3 = vmul.u32.u64.high %v570_v19, %v569_v28, %v2873_v18  ;;  %923 = vst [vmem:[%s2876_s1] sm:$0xff] %v2285_v30  ;;  %924 = vst [vmem:[%s2876_s1 + $0x8] sm:$0xff] %v2285_v30  ;;  %v925_v6 = vmul.f32 1.7320508, %v2483_v40 }
  0xa1   : > { %v580_v5 = vadd.s32 1, %v2860_v25  ;;  %v926_v43 = vmul.f32 1.7320508, %v2572_v53  ;;  %v930_v8 = vmul.f32 1.7320508, %v2486_v41  ;;  %v940_v60 = vmul.f32 %v2493_v45, %v2483_v40 }
  0xa2   : > { %vm2014_vm13 = vcmp.lt.s32.totalorder %v2013_v27, 0  ;;  %2041 = vst [vmem:[%s2876_s1 + $0x10] sm:$0xff] %v925_v6  ;;  %v931_v38 = vmul.f32 1.7320508, %v2577_v54  ;;  %v935_v63 = vmul.f32 1.7320508, %v2493_v45  ;;  %v941_v1 = vmul.f32 %v2581_v31, %v2572_v53 }
  0xa3   : > { %v489_v55 = vsel %vm2014_vm13, 0, %v2013_v27  ;;  %2042 = vst [vmem:[%s2876_s1 + $0x18] sm:$0xff] %v926_v43  ;;  %2043 = vst [vmem:[%s2876_s1 + $0x20] sm:$0xff] %v930_v8  ;;  %v936_v34 = vmul.f32 1.7320508, %v2581_v31  ;;  %v947_v13 = vmul.f32 %v2486_v41, %v2483_v40  ;;  %v2898_v35 = vadd.s32 3, %v2869_v42 }
  0xa4   : > { %v942_v29 = vmul.f32 3.8729835, %v940_v60  ;;  %v490_v48 = vsub.s32 32, %v489_v55  ;;  %v491_v46 = vshll.u32 %v2814_v33, %v489_v55  ;;  %v494_v14 = vsub.s32 4294967266, %v489_v55  ;;  %2044 = vst [vmem:[%s2876_s1 + $0x28] sm:$0xff] %v931_v38  ;;  %2045 = vst [vmem:[%s2876_s1 + $0x30] sm:$0xff] %v935_v63 }
  0xa5   : > { %vm579_vm14 = vc.u32 %v2874_v3, %v2859_v26  ;;  %2046 = vst [vmem:[%s2876_s1 + $0x38] sm:$0xff] %v936_v34  ;;  %v943_v2 = vmul.f32 3.8729835, %v941_v1  ;;  %v949_v58 = vmul.f32 3.8729835, %v947_v13  ;;  %v948_v4 = vmul.f32 %v2577_v54, %v2572_v53 }
  0xa6   : > { %2047 = vst [vmem:[%s2876_s1 + $0x40] sm:$0xff] %v942_v29  ;;  %v492_v33 = vshrl.u32 %v2826_v47, %v490_v48  ;;  %v495_v52 = vadd.s32 127, %v494_v14  ;;  %vm524_vm15 = vcmp.lt.s32.totalorder %v2555_v21, 0  ;;  %v581_v62 = vsel %vm579_vm14, %v580_v5, %v2860_v25 }
  0xa7   : > { %v954_v16 = vmul.f32 %v2486_v41, %v2486_v41  ;;  %vm2915_vm0 = vcmp.le.f32.partialorder %v522_v7, 0.7853982  ;;  %v582_v49 = vadd.s32 %v581_v62, %v577_v44  ;;  %2048 = vst [vmem:[%s2876_s1 + $0x48] sm:$0xff] %v943_v2  ;;  %2049 = vst [vmem:[%s2876_s1 + $0x50] sm:$0xff] %v949_v58  ;;  %v950_v47 = vmul.f32 3.8729835, %v948_v4 }
  0xa8   : > { %v956_v11 = vmul.f32 %v2483_v40, %v2483_v40  ;;  %v958_v24 = vmul.f32 %v2493_v45, %v2493_v45  ;;  %v493_v32 = vor.u32 %v492_v33, %v491_v46  ;;  %v496_v10 = vshll.u32 %v495_v52, 23 }
  0xa9   : > { %v955_v25 = vmul.f32 %v2577_v54, %v2577_v54  ;;  %v957_v7 = vmul.f32 %v2572_v53, %v2572_v53  ;;  %v583_v51 = vadd.s32 536870912, %v582_v49  ;;  %2050 = vst [vmem:[%s2876_s1 + $0x58] sm:$0xff] %v950_v47  ;;  %v959_v44 = vmul.f32 %v2581_v31, %v2581_v31 }
  0xaa   : > { %v960_v28 = vadd.f32 %v958_v24, %v956_v11  ;;  %v971_v40 = vmul.f32 %v2493_v45, %v2486_v41  ;;  %v2935_v27 = vpop.eup %2219  ;;  %v497_v18 = vor.u32 4788187, %v496_v10  ;;  %v500_v30 = vcvt.s32.f32 %v493_v32 }
  0xab   : > { %v972_v6 = vmul.f32 %v2581_v31, %v2577_v54  ;;  %v978_v5 = vsub.f32 %v958_v24, %v956_v11  ;;  %v2939_v53 = vpop.eup %2221  ;;  %v584_v43 = vshrl.u32 %v583_v51, 30  ;;  %v961_v60 = vadd.f32 %v959_v44, %v957_v7 }
  0xac   : > { %v962_v8 = vmul.f32 0.5, %v960_v28  ;;  %v973_v38 = vmul.f32 3.8729835, %v971_v40  ;;  %v498_v63 = vand.u32 2147483647, %v497_v18  ;;  %v979_v1 = vsub.f32 %v959_v44, %v957_v7 }
  0xad   : > { %v974_v41 = vmul.f32 3.8729835, %v972_v6  ;;  %v980_v45 = vmul.f32 1.9364917, %v978_v5  ;;  %v585_v55 = vshll.u32 %v584_v43, 30  ;;  %v608_v34 = vsub.s32 4, %v584_v43 }
  0xae   : > { %v964_v29 = vsub.f32 %v954_v16, %v962_v8  ;;  %v963_v13 = vmul.f32 0.5, %v961_v60  ;;  %2053 = vst [vmem:[%s2876_s1 + $0x70] sm:$0xff] %v973_v38  ;;  %v501_v54 = vmul.f32 %v500_v30, %v498_v63  ;;  %v981_v31 = vmul.f32 1.9364917, %v979_v1 }
  0xaf   : > { %2054 = vst [vmem:[%s2876_s1 + $0x78] sm:$0xff] %v974_v41  ;;  %2055 = vst [vmem:[%s2876_s1 + $0x80] sm:$0xff] %v980_v45  ;;  %v1089_v48 = vmul.f32 4.785117e-06, %v2773_v0  ;;  %v1090_v46 = vmul.f32 4.785117e-06, %v2848_v57  ;;  %v2946_v14 = vsub.s32 %v582_v49, %v585_v55  ;;  %v609_v2 = vsel %vm524_vm15, %v608_v34, %v584_v43 }
  0xb0   : > { %v966_v58 = vmul.f32 2.236068, %v964_v29  ;;  %v965_v4 = vsub.f32 %v955_v25, %v963_v13  ;;  %v502_v33 = vxor.u32 2147483648, %v501_v54  ;;  %v611_v52 = vsel %vm2915_vm0, 0, %v609_v2  ;;  %2056 = vst [vmem:[%s2876_s1 + $0x88] sm:$0xff] %v981_v31 }
  0xb1   : > { %1091 = vst [vmem:[%s2955_s22] sm:$0xff] %v1089_v48  ;;  %1092 = vst [vmem:[%s2955_s22 + $0x8] sm:$0xff] %v1090_v46  ;;  %v1093_v62 = vmul.f32 %v2773_v0, %v2757_v12  ;;  %v1094_v16 = vmul.f32 %v2848_v57, %v2838_v9  ;;  %2223 = vpow2.f32 %v2865_v37  ;;  %v588_v49 = vsub.s32 0, %v2946_v14 }
  0xb2   : > { %v615_v47 = vadd.s32 3, %v611_v52  ;;  %2051 = vst [vmem:[%s2876_s1 + $0x60] sm:$0xff] %v966_v58  ;;  %v967_v11 = vmul.f32 2.236068, %v965_v4  ;;  %v503_v24 = vsel %vm420_vm7, %v502_v33, %v501_v54  ;;  %v1100_v25 = vmul.f32 %v2757_v12, %v2757_v12 }
  0xb3   : > { %v1095_v32 = vmul.f32 0.0019304542, %v1093_v62  ;;  %v1096_v10 = vmul.f32 0.0019304542, %v1094_v16  ;;  %2225 = vpow2.f32 %v2863_v20  ;;  %v506_v37 = vsel %vm2805_vm9, %v2477_v36, %v503_v24 }
  0xb4   : > { %v2975_v7 = vand.u32 3, %v2869_v42  ;;  %v2016_v51 = vmin.u32 %v588_v49, %v2946_v14  ;;  %2052 = vst [vmem:[%s2876_s1 + $0x68] sm:$0xff] %v967_v11  ;;  %2227 = vcosq.f32 %v506_v37  ;;  %v2980_v28 = vand.u32 3, %v2898_v35 }
  0xb5   : > { %v2983_v44 = vmul.f32 0.4, %v2528_v61  ;;  %2074 = vst [vmem:[%s2955_s22 + $0x10] sm:$0xff] %v1095_v32  ;;  %2075 = vst [vmem:[%s2955_s22 + $0x18] sm:$0xff] %v1096_v10  ;;  %v1102_v20 = vmul.f32 %v2773_v0, %v1100_v25  ;;  %2229 = vsinq.f32 %v506_v37  ;;  %v578_v50 = vadd.s32 %v2859_v26, %v2874_v3 }
  0xb6   : > { %v590_v42 = vclz %v2016_v51  ;;  %v2990_v40 = vand.u32 3, %v611_v52  ;;  %v2992_v18 = vand.u32 3, %v615_v47  ;;  %v1101_v61 = vmul.f32 %v2838_v9, %v2838_v9 }
  0xb7   : > { %v1104_v35 = vmul.f32 0.10539922, %v1102_v20  ;;  %v1109_v30 = vmul.f32 %v2757_v12, %v1100_v25  ;;  %v1200_v5 = vmul.f32 4.785117e-06, %v2810_v39  ;;  %v1201_v43 = vmul.f32 4.785117e-06, %v2939_v53 }
  0xb8   : > { %v2017_v6 = vadd.s32 4294967294, %v590_v42  ;;  %v1205_v26 = vmul.f32 %v2810_v39, %v2799_v15  ;;  %v1103_v3 = vmul.f32 %v2848_v57, %v1101_v61  ;;  %v1110_v60 = vmul.f32 %v2838_v9, %v1101_v61 }
  0xb9   : > { %2076 = vst [vmem:[%s2955_s22 + $0x20] sm:$0xff] %v1104_v35  ;;  %v1111_v8 = vmul.f32 %v2773_v0, %v1109_v30  ;;  %v1118_v38 = vmul.f32 %v2757_v12, %v1109_v30  ;;  %vm517_vm1 = vcmp.eq.s32.totalorder %v2980_v28, 2  ;;  %vm724_vm2 = vcmp.eq.s32.totalorder %v2975_v7, 2  ;;  %2088 = vst [vmem:[%s2955_s22 + $0x80] sm:$0xff] %v1200_v5 }
  0xba   : > { %vm2018_vm3 = vcmp.lt.s32.totalorder %v2017_v6, 0  ;;  %2089 = vst [vmem:[%s2955_s22 + $0x88] sm:$0xff] %v1201_v43  ;;  %v1207_v63 = vmul.f32 0.0019304542, %v1205_v26  ;;  %v1206_v41 = vmul.f32 %v2939_v53, %v2935_v27  ;;  %v3014_v45 = vmul.f32 %v2799_v15, %v2799_v15 }
  0xbb   : > { %vm514_vm4 = vcmp.eq.s32.totalorder %v2980_v28, 0  ;;  %vm721_vm5 = vcmp.eq.s32.totalorder %v2975_v7, 0  ;;  %v593_v1 = vsel %vm2018_vm3, 0, %v2017_v6  ;;  %v1105_v55 = vmul.f32 0.10539922, %v1103_v3 }
  0xbc   : > { %v1113_v34 = vmul.f32 0.7788008, %v1111_v8  ;;  %v1112_v29 = vmul.f32 %v2848_v57, %v1110_v60  ;;  %vm513_vm6 = vcmp.lt.s32.totalorder %v2980_v28, 2  ;;  %vm720_vm7 = vcmp.lt.s32.totalorder %v2975_v7, 2  ;;  %2090 = vst [vmem:[%s2955_s22 + $0x90] sm:$0xff] %v1207_v63 }
  0xbd   : > { %v594_v13 = vsub.s32 32, %v593_v1  ;;  %v595_v54 = vshll.u32 %v2946_v14, %v593_v1  ;;  %v598_v31 = vsub.s32 4294967266, %v593_v1  ;;  %v1120_v48 = vmul.f32 %v2773_v0, %v1118_v38  ;;  %2077 = vst [vmem:[%s2955_s22 + $0x28] sm:$0xff] %v1105_v55 }
  0xbe   : > { %vm510_vm8 = vweird.f32 %v2477_v36  ;;  %2078 = vst [vmem:[%s2955_s22 + $0x30] sm:$0xff] %v1113_v34  ;;  %v1114_v46 = vmul.f32 0.7788008, %v1112_v29  ;;  %v1119_v2 = vmul.f32 %v2838_v9, %v1110_v60  ;;  %v1127_v58 = vmul.f32 %v2757_v12, %v1118_v38  ;;  %v3031_v16 = vpop.eup %2223 }
  0xbf   : > { %v1208_v4 = vmul.f32 0.0019304542, %v1206_v41  ;;  %v596_v33 = vshrl.u32 %v578_v50, %v594_v13  ;;  %v599_v52 = vadd.s32 127, %v598_v31  ;;  %v1122_v14 = vmul.f32 0.7788008, %v1120_v48 }
  0xc0   : > { %v1214_v62 = vmul.f32 %v2810_v39, %v3014_v45  ;;  %2079 = vst [vmem:[%s2955_s22 + $0x38] sm:$0xff] %v1114_v46  ;;  %v1121_v49 = vmul.f32 %v2848_v57, %v1119_v2  ;;  %v1129_v47 = vmul.f32 %v2773_v0, %v1127_v58  ;;  %v1128_v11 = vmul.f32 %v2838_v9, %v1119_v2  ;;  %v3042_v51 = vpop.eup %2225 }
  0xc1   : > { %v1136_v24 = vmul.f32 %v2757_v12, %v1127_v58  ;;  %2091 = vst [vmem:[%s2955_s22 + $0x98] sm:$0xff] %v1208_v4  ;;  %v597_v32 = vor.u32 %v596_v33, %v595_v54  ;;  %v600_v10 = vshll.u32 %v599_v52, 23  ;;  %2080 = vst [vmem:[%s2955_s22 + $0x40] sm:$0xff] %v1122_v14  ;;  %v1213_v37 = vmul.f32 %v2935_v27, %v2935_v27  ;;  %v2228_v61 = vpop.eup %2227 }
  0xc2   : > { %v1216_v25 = vmul.f32 0.10539922, %v1214_v62  ;;  %v1123_v20 = vmul.f32 0.7788008, %v1121_v49  ;;  %v1131_v50 = vmul.f32 0.10539922, %v1129_v47  ;;  %v1130_v42 = vmul.f32 %v2848_v57, %v1128_v11  ;;  %v2230_v26 = vpop.eup %2229 }
  0xc3   : > { %v1138_v35 = vmul.f32 %v2773_v0, %v1136_v24  ;;  %v601_v30 = vor.u32 4788187, %v600_v10  ;;  %v604_v6 = vcvt.s32.f32 %v597_v32  ;;  %v1137_v5 = vmul.f32 %v2838_v9, %v1128_v11 }
  0xc4   : > { %v1145_v43 = vmul.f32 %v2757_v12, %v1136_v24  ;;  %2092 = vst [vmem:[%s2955_s22 + $0xa0] sm:$0xff] %v1216_v25  ;;  %v518_v3 = vxor.u32 2147483648, %v2228_v61  ;;  %2081 = vst [vmem:[%s2955_s22 + $0x48] sm:$0xff] %v1123_v20  ;;  %v1132_v8 = vmul.f32 0.10539922, %v1130_v42  ;;  %v1215_v38 = vmul.f32 %v2939_v53, %v1213_v37 }
  0xc5   : > { %2082 = vst [vmem:[%s2955_s22 + $0x50] sm:$0xff] %v1131_v50  ;;  %v1140_v60 = vmul.f32 0.0019304542, %v1138_v35  ;;  %v515_v63 = vxor.u32 2147483648, %v2230_v26  ;;  %v602_v41 = vand.u32 2147483647, %v601_v30  ;;  %v1139_v1 = vmul.f32 %v2848_v57, %v1137_v5 }
  0xc6   : > { %v1147_v55 = vmul.f32 %v2773_v0, %v1145_v43  ;;  %v519_v12 = vsel %vm517_vm1, %v518_v3, %v2230_v26  ;;  %v726_v34 = vsel %vm724_vm2, %v518_v3, %v2230_v26  ;;  %2083 = vst [vmem:[%s2955_s22 + $0x58] sm:$0xff] %v1132_v8  ;;  %v1146_v29 = vmul.f32 %v2838_v9, %v1137_v5 }
  0xc7   : > { %2084 = vst [vmem:[%s2955_s22 + $0x60] sm:$0xff] %v1140_v60  ;;  %v1217_v13 = vmul.f32 0.10539922, %v1215_v38  ;;  %v516_v54 = vsel %vm514_vm4, %v2228_v61, %v515_v63  ;;  %v723_v31 = vsel %vm721_vm5, %v2228_v61, %v515_v63  ;;  %v605_v0 = vmul.f32 %v604_v6, %v602_v41 }
  0xc8   : > { %v1141_v48 = vmul.f32 0.0019304542, %v1139_v1  ;;  %v520_v46 = vsel %vm513_vm6, %v516_v54, %v519_v12  ;;  %v727_v2 = vsel %vm720_vm7, %v723_v31, %v726_v34  ;;  %v1149_v58 = vmul.f32 4.785117e-06, %v1147_v55 }
  0xc9   : > { %v1148_v9 = vmul.f32 %v2848_v57, %v1146_v29  ;;  %2093 = vst [vmem:[%s2955_s22 + $0xa8] sm:$0xff] %v1217_v13  ;;  %v521_v4 = vsel %vm510_vm8, nan, %v520_v46  ;;  %v728_v33 = vsel %vm510_vm8, nan, %v727_v2  ;;  %v606_v52 = vxor.u32 2147483648, %v605_v0 }
  0xca   : > { %2085 = vst [vmem:[%s2955_s22 + $0x68] sm:$0xff] %v1141_v48  ;;  %v1221_v28 = vmul.f32 %v2799_v15, %v3014_v45  ;;  %v3079_v14 = vadd.f32 %v728_v33, %v728_v33  ;;  %v862_v7 = vmul.f32 %v2782_v56, %v521_v4  ;;  %2086 = vst [vmem:[%s2955_s22 + $0x70] sm:$0xff] %v1149_v58  ;;  %v1312_v11 = vmul.f32 4.785117e-06, %v2822_v59 }
  0xcb   : > { %v1150_v57 = vmul.f32 4.785117e-06, %v1148_v9  ;;  %v1222_v62 = vmul.f32 %v2935_v27, %v1213_v37  ;;  %v607_v36 = vsel %vm524_vm15, %v606_v52, %v605_v0  ;;  %v1313_v26 = vmul.f32 4.785117e-06, %v3042_v51 }
  0xcc   : > { %v1223_v49 = vmul.f32 %v2810_v39, %v1221_v28  ;;  %v1230_v47 = vmul.f32 %v2799_v15, %v1221_v28  ;;  %v878_v45 = vmul.f32 %v862_v7, %v2755_v23  ;;  %v610_v24 = vsel %vm2915_vm0, %v2555_v21, %v607_v36  ;;  %2104 = vst [vmem:[%s2955_s22 + $0x100] sm:$0xff] %v1312_v11 }
  0xcd   : > { %v834_v32 = vmul.f32 %v3079_v14, %v521_v4  ;;  %2087 = vst [vmem:[%s2955_s22 + $0x78] sm:$0xff] %v1150_v57  ;;  %v1224_v10 = vmul.f32 %v2939_v53, %v1222_v62  ;;  %2231 = vcosq.f32 %v610_v24  ;;  %v1231_v20 = vmul.f32 %v2935_v27, %v1222_v62  ;;  %2105 = vst [vmem:[%s2955_s22 + $0x108] sm:$0xff] %v1313_v26 }
  0xce   : > { %v1225_v25 = vmul.f32 0.7788008, %v1223_v49  ;;  %v1232_v37 = vmul.f32 %v2810_v39, %v1230_v47  ;;  %880 = vst [vmem:[%s3101_s21] sm:$0xff] %v878_v45  ;;  %2233 = vsinq.f32 %v610_v24  ;;  %v1239_v30 = vmul.f32 %v2799_v15, %v1230_v47 }
  0xcf   : > { %v864_v19 = vmul.f32 %v2782_v56, %v834_v32  ;;  %v836_v50 = vmul.f32 %v834_v32, %v3079_v14  ;;  %v1226_v42 = vmul.f32 0.7788008, %v1224_v10  ;;  %v1233_v61 = vmul.f32 %v2939_v53, %v1231_v20 }
  0xd0   : > { %2094 = vst [vmem:[%s2955_s22 + $0xb0] sm:$0xff] %v1225_v25  ;;  %v1234_v35 = vmul.f32 0.7788008, %v1232_v37  ;;  %v1240_v6 = vmul.f32 %v2935_v27, %v1231_v20  ;;  %v1317_v3 = vmul.f32 %v2835_v17, %v2822_v59  ;;  %v1241_v60 = vmul.f32 %v2810_v39, %v1239_v30 }
  0xd1   : > { %v882_v5 = vmul.f32 %v864_v19, %v2755_v23  ;;  %v838_v43 = vsub.f32 %v836_v50, %v521_v4  ;;  %2095 = vst [vmem:[%s2955_s22 + $0xb8] sm:$0xff] %v1226_v42  ;;  %v1235_v8 = vmul.f32 0.7788008, %v1233_v61  ;;  %v1248_v63 = vmul.f32 %v2799_v15, %v1239_v30 }
  0xd2   : > { %2096 = vst [vmem:[%s2955_s22 + $0xc0] sm:$0xff] %v1234_v35  ;;  %v1242_v38 = vmul.f32 %v2939_v53, %v1240_v6  ;;  %vm827_vm9 = vcmp.eq.s32.totalorder %v2990_v40, 2  ;;  %v1249_v55 = vmul.f32 %v2935_v27, %v1240_v6  ;;  %v1319_v12 = vmul.f32 0.0019304542, %v1317_v3 }
  0xd3   : > { %2027 = vst [vmem:[%s3101_s21 + $0x10] sm:$0xff] %v882_v5  ;;  %v866_v41 = vmul.f32 %v2782_v56, %v838_v43  ;;  %v840_v1 = vmul.f32 %v838_v43, %v3079_v14  ;;  %vm618_vm10 = vcmp.eq.s32.totalorder %v2992_v18, 0  ;;  %vm824_vm11 = vcmp.eq.s32.totalorder %v2990_v40, 0  ;;  %2097 = vst [vmem:[%s2955_s22 + $0xc8] sm:$0xff] %v1235_v8 }
  0xd4   : > { %v1243_v34 = vmul.f32 0.10539922, %v1241_v60  ;;  %v1244_v29 = vmul.f32 0.10539922, %v1242_v38  ;;  %v1250_v13 = vmul.f32 %v2810_v39, %v1248_v63  ;;  %v1257_v54 = vmul.f32 %v2799_v15, %v1248_v63  ;;  %2106 = vst [vmem:[%s2955_s22 + $0x110] sm:$0xff] %v1319_v12 }
  0xd5   : > { %vm617_vm12 = vcmp.lt.s32.totalorder %v2992_v18, 2  ;;  %vm823_vm13 = vcmp.lt.s32.totalorder %v2990_v40, 2  ;;  %v887_v31 = vmul.f32 %v866_v41, %v2755_v23  ;;  %v842_v0 = vsub.f32 %v840_v1, %v834_v32 }
  0xd6   : > { %v1251_v48 = vmul.f32 %v2939_v53, %v1249_v55  ;;  %v1258_v46 = vmul.f32 %v2935_v27, %v1249_v55  ;;  %vm614_vm14 = vweird.f32 %v2555_v21  ;;  %2098 = vst [vmem:[%s2955_s22 + $0xd0] sm:$0xff] %v1243_v34  ;;  %2099 = vst [vmem:[%s2955_s22 + $0xd8] sm:$0xff] %v1244_v29  ;;  %v1252_v2 = vmul.f32 0.0019304542, %v1250_v13 }
  0xd7   : > { %v1259_v15 = vmul.f32 %v2810_v39, %v1257_v54  ;;  %v1318_v58 = vmul.f32 %v3042_v51, %v3031_v16  ;;  %v1324_v9 = vmul.f32 %v2835_v17, %v2835_v17  ;;  %2029 = vst [vmem:[%s3101_s21 + $0x20] sm:$0xff] %v887_v31  ;;  %v868_v4 = vmul.f32 %v2782_v56, %v842_v0 }
  0xd8   : > { %v844_v27 = vmul.f32 %v842_v0, %v3079_v14  ;;  %v1253_v33 = vmul.f32 0.0019304542, %v1251_v48  ;;  %v1260_v52 = vmul.f32 %v2939_v53, %v1258_v46  ;;  %2100 = vst [vmem:[%s2955_s22 + $0xe0] sm:$0xff] %v1252_v2  ;;  %v1325_v57 = vmul.f32 %v3031_v16, %v3031_v16 }
  0xd9   : > { %v1261_v28 = vmul.f32 4.785117e-06, %v1259_v15  ;;  %v1320_v39 = vmul.f32 0.0019304542, %v1318_v58  ;;  %v1326_v7 = vmul.f32 %v2822_v59, %v1324_v9  ;;  %v892_v62 = vmul.f32 %v868_v4, %v2755_v23 }
  0xda   : > { %v846_v36 = vsub.f32 %v844_v27, %v838_v43  ;;  %2101 = vst [vmem:[%s2955_s22 + $0xe8] sm:$0xff] %v1253_v33  ;;  %v1262_v49 = vmul.f32 4.785117e-06, %v1260_v52  ;;  %v1333_v47 = vmul.f32 %v2835_v17, %v1324_v9  ;;  %vm621_vm15 = vcmp.eq.s32.totalorder %v2992_v18, 2  ;;  %v2232_v24 = vpop.eup %2231 }
  0xdb   : > { %2102 = vst [vmem:[%s2955_s22 + $0xf0] sm:$0xff] %v1261_v28  ;;  %2107 = vst [vmem:[%s2955_s22 + $0x118] sm:$0xff] %v1320_v39  ;;  %v1328_v53 = vmul.f32 0.10539922, %v1326_v7  ;;  %v1327_v11 = vmul.f32 %v3042_v51, %v1325_v57  ;;  %v1334_v45 = vmul.f32 %v3031_v16, %v1325_v57  ;;  %v2234_v20 = vpop.eup %2233  ;;  %v622_v19 = vxor.u32 2147483648, %v2232_v24 }
  0xdc   : > { %2031 = vst [vmem:[%s3101_s21 + $0x30] sm:$0xff] %v892_v62  ;;  %v870_v32 = vmul.f32 %v2782_v56, %v846_v36  ;;  %v848_v10 = vmul.f32 %v846_v36, %v3079_v14  ;;  %2103 = vst [vmem:[%s2955_s22 + $0xf8] sm:$0xff] %v1262_v49  ;;  %v1335_v25 = vmul.f32 %v2822_v59, %v1333_v47  ;;  %v619_v61 = vxor.u32 2147483648, %v2234_v20 }
  0xdd   : > { %v1342_v37 = vmul.f32 %v2835_v17, %v1333_v47  ;;  %2108 = vst [vmem:[%s2955_s22 + $0x120] sm:$0xff] %v1328_v53  ;;  %v1329_v50 = vmul.f32 0.10539922, %v1327_v11  ;;  %v1336_v42 = vmul.f32 %v3042_v51, %v1334_v45  ;;  %v1343_v35 = vmul.f32 %v3031_v16, %v1334_v45 }
  0xde   : > { %v897_v30 = vmul.f32 %v870_v32, %v2755_v23  ;;  %v850_v6 = vsub.f32 %v848_v10, %v842_v0  ;;  %v1337_v5 = vmul.f32 0.7788008, %v1335_v25  ;;  %v623_v43 = vsel %vm621_vm15, %v622_v19, %v2234_v20 }
  0xdf   : > { %v829_v26 = vsel %vm827_vm9, %v622_v19, %v2234_v20  ;;  %2109 = vst [vmem:[%s2955_s22 + $0x128] sm:$0xff] %v1329_v50  ;;  %v1338_v3 = vmul.f32 0.7788008, %v1336_v42  ;;  %v1344_v8 = vmul.f32 %v2822_v59, %v1342_v37  ;;  %v620_v60 = vsel %vm618_vm10, %v2232_v24, %v619_v61 }
  0xe0   : > { %v826_v38 = vsel %vm824_vm11, %v2232_v24, %v619_v61  ;;  %2033 = vst [vmem:[%s3101_s21 + $0x40] sm:$0xff] %v897_v30  ;;  %v872_v63 = vmul.f32 %v2782_v56, %v850_v6  ;;  %v852_v41 = vmul.f32 %v850_v6, %v3079_v14  ;;  %2110 = vst [vmem:[%s2955_s22 + $0x130] sm:$0xff] %v1337_v5 }
  0xe1   : > { %v624_v1 = vsel %vm617_vm12, %v620_v60, %v623_v43  ;;  %v830_v55 = vsel %vm823_vm13, %v826_v38, %v829_v26  ;;  %2111 = vst [vmem:[%s2955_s22 + $0x138] sm:$0xff] %v1338_v3  ;;  %v1346_v12 = vmul.f32 0.7788008, %v1344_v8  ;;  %v1345_v34 = vmul.f32 %v3042_v51, %v1343_v35 }
  0xe2   : > { %v625_v29 = vsel %vm614_vm14, nan, %v624_v1  ;;  %v831_v13 = vsel %vm614_vm14, nan, %v830_v55  ;;  %v902_v54 = vmul.f32 %v872_v63, %v2755_v23  ;;  %v854_v31 = vsub.f32 %v852_v41, %v846_v36  ;;  %v1463_v55 = vld [vmem:[%s3101_s21] sm:$0xff] (%p3459_p5) }
  0xe3   : > { %v3195_v0 = vadd.f32 %v831_v13, %v831_v13  ;;  %v863_v18 = vmul.f32 %v2983_v44, %v625_v29  ;;  %2112 = vst [vmem:[%s2955_s22 + $0x140] sm:$0xff] %v1346_v12  ;;  %v1347_v40 = vmul.f32 0.7788008, %v1345_v34  ;;  %v1351_v48 = vmul.f32 %v2835_v17, %v1342_v37  ;;  %v1471_v34 = vld [vmem:[%s3101_s21 + $0x20] sm:$0xff] (%p3459_p5)  ;;  %1464 = vst [vmem:[%s1404_s8] sm:$0xff] (%p3459_p5), %v1463_v55  ;;  %v1475_v13 = vld [vmem:[%s3101_s21 + $0x30] sm:$0xff] (%p3459_p5) }
  0xe4   : > { %2035 = vst [vmem:[%s3101_s21 + $0x50] sm:$0xff] %v902_v54  ;;  %v874_v46 = vmul.f32 %v2782_v56, %v854_v31  ;;  %v856_v2 = vmul.f32 %v854_v31, %v3079_v14  ;;  %v1352_v21 = vmul.f32 %v3031_v16, %v1343_v35  ;;  %1472 = vst [vmem:[%s1404_s8 + $0x40] sm:$0xff] (%p3459_p5), %v1471_v34 }
  0xe5   : > { %v879_v15 = vmul.f32 %v863_v18, %v2842_v22  ;;  %v835_v58 = vmul.f32 %v3195_v0, %v625_v29  ;;  %2113 = vst [vmem:[%s2955_s22 + $0x148] sm:$0xff] %v1347_v40  ;;  %v1353_v9 = vmul.f32 %v2822_v59, %v1351_v48  ;;  %v1360_v4 = vmul.f32 %v2835_v17, %v1351_v48 }
  0xe6   : > { %v907_v27 = vmul.f32 %v874_v46, %v2755_v23  ;;  %v858_v33 = vsub.f32 %v856_v2, %v850_v6  ;;  %v1354_v52 = vmul.f32 %v3042_v51, %v1352_v21  ;;  %v1361_v14 = vmul.f32 %v3031_v16, %v1352_v21  ;;  %1476 = vst [vmem:[%s1404_s8 + $0x60] sm:$0xff] (%p3459_p5), %v1475_v13 }
  0xe7   : > { %881 = vst [vmem:[%s3101_s21 + $0x8] sm:$0xff] %v879_v15  ;;  %v865_v28 = vmul.f32 %v2983_v44, %v835_v58  ;;  %v837_v39 = vmul.f32 %v835_v58, %v3195_v0  ;;  %v1355_v7 = vmul.f32 0.10539922, %v1353_v9  ;;  %v1362_v57 = vmul.f32 %v2822_v59, %v1360_v4  ;;  %v1479_v31 = vld [vmem:[%s3101_s21 + $0x40] sm:$0xff] (%p3459_p5) }
  0xe8   : > { %2037 = vst [vmem:[%s3101_s21 + $0x60] sm:$0xff] %v907_v27  ;;  %v876_v62 = vmul.f32 %v2782_v56, %v858_v33  ;;  %v1356_v36 = vmul.f32 0.10539922, %v1354_v52  ;;  %v1363_v49 = vmul.f32 %v3042_v51, %v1361_v14  ;;  %v1369_v47 = vmul.f32 %v2835_v17, %v1360_v4  ;;  %1480 = vst [vmem:[%s1404_s8 + $0x80] sm:$0xff] (%p3459_p5), %v1479_v31 }
  0xe9   : > { %v883_v53 = vmul.f32 %v865_v28, %v2842_v22  ;;  %v839_v11 = vsub.f32 %v837_v39, %v625_v29  ;;  %2114 = vst [vmem:[%s2955_s22 + $0x150] sm:$0xff] %v1355_v7  ;;  %v1364_v45 = vmul.f32 0.0019304542, %v1362_v57  ;;  %v1370_v24 = vmul.f32 %v3031_v16, %v1361_v14 }
  0xea   : > { %v912_v32 = vmul.f32 %v876_v62, %v2755_v23  ;;  %2115 = vst [vmem:[%s2955_s22 + $0x158] sm:$0xff] %v1356_v36  ;;  %v1365_v56 = vmul.f32 0.0019304542, %v1363_v49  ;;  %v1371_v10 = vmul.f32 %v2822_v59, %v1369_v47 }
  0xeb   : > { %2028 = vst [vmem:[%s3101_s21 + $0x18] sm:$0xff] %v883_v53  ;;  %v867_v17 = vmul.f32 %v2983_v44, %v839_v11  ;;  %v841_v25 = vmul.f32 %v839_v11, %v3195_v0  ;;  %2116 = vst [vmem:[%s2955_s22 + $0x160] sm:$0xff] %v1364_v45  ;;  %v1372_v37 = vmul.f32 %v3042_v51, %v1370_v24  ;;  %v1483_v18 = vld [vmem:[%s3101_s21 + $0x50] sm:$0xff] (%p3459_p5) }
  0xec   : > { %2039 = vst [vmem:[%s3101_s21 + $0x70] sm:$0xff] %v912_v32  ;;  %2117 = vst [vmem:[%s2955_s22 + $0x168] sm:$0xff] %v1365_v56  ;;  %v1373_v16 = vmul.f32 4.785117e-06, %v1371_v10 }
  0xed   : > { %v888_v23 = vmul.f32 %v867_v17, %v2842_v22  ;;  %v843_v20 = vsub.f32 %v841_v25, %v835_v58  ;;  %v1374_v19 = vmul.f32 4.785117e-06, %v1372_v37  ;;  %1484 = vst [vmem:[%s1404_s8 + $0xa0] sm:$0xff] (%p3459_p5), %v1483_v18 }
  0xee   : > { %2118 = vst [vmem:[%s2955_s22 + $0x170] sm:$0xff] %v1373_v16  ;;  %v1465_v12 = vld [vmem:[%s3101_s21 + $0x8] sm:$0xff] (%p3459_p5) }
  0xef   : > { %2030 = vst [vmem:[%s3101_s21 + $0x28] sm:$0xff] %v888_v23  ;;  %v869_v59 = vmul.f32 %v2983_v44, %v843_v20  ;;  %v845_v50 = vmul.f32 %v843_v20, %v3195_v0  ;;  %2119 = vst [vmem:[%s2955_s22 + $0x178] sm:$0xff] %v1374_v19  ;;  %v1487_v48 = vld [vmem:[%s3101_s21 + $0x60] sm:$0xff] (%p3459_p5) }
  0xf0   : > { %1466 = vst [vmem:[%s1404_s8 + $0x8] sm:$0xff] (%p3459_p5), %v1465_v12  ;;  %1488 = vst [vmem:[%s1404_s8 + $0xc0] sm:$0xff] (%p3459_p5), %v1487_v48 }
  0xf1   : > { %v893_v42 = vmul.f32 %v869_v59, %v2842_v22  ;;  %v847_v35 = vsub.f32 %v845_v50, %v839_v11 }
  0xf3   : > { %2032 = vst [vmem:[%s3101_s21 + $0x38] sm:$0xff] %v893_v42  ;;  %v871_v51 = vmul.f32 %v2983_v44, %v847_v35  ;;  %v849_v61 = vmul.f32 %v847_v35, %v3195_v0  ;;  %v1491_v2 = vld [vmem:[%s3101_s21 + $0x70] sm:$0xff] (%p3459_p5) }
  0xf4   : > { %1492 = vst [vmem:[%s1404_s8 + $0xe0] sm:$0xff] (%p3459_p5), %v1491_v2 }
  0xf5   : > { %v898_v30 = vmul.f32 %v871_v51, %v2842_v22  ;;  %v851_v6 = vsub.f32 %v849_v61, %v843_v20 }
  0xf6   : > { %v1473_v29 = vld [vmem:[%s3101_s21 + $0x28] sm:$0xff] (%p3459_p5) }
  0xf7   : > { %2034 = vst [vmem:[%s3101_s21 + $0x48] sm:$0xff] %v898_v30  ;;  %v873_v5 = vmul.f32 %v2983_v44, %v851_v6  ;;  %v853_v43 = vmul.f32 %v851_v6, %v3195_v0  ;;  %1474 = vst [vmem:[%s1404_s8 + $0x48] sm:$0xff] (%p3459_p5), %v1473_v29 }
  0xf9   : > { %v903_v26 = vmul.f32 %v873_v5, %v2842_v22  ;;  %v855_v3 = vsub.f32 %v853_v43, %v847_v35 }
  0xfa   : > { %v1477_v54 = vld [vmem:[%s3101_s21 + $0x38] sm:$0xff] (%p3459_p5) }
  0xfb   : > { %2036 = vst [vmem:[%s3101_s21 + $0x58] sm:$0xff] %v903_v26  ;;  %v875_v8 = vmul.f32 %v2983_v44, %v855_v3  ;;  %v857_v60 = vmul.f32 %v855_v3, %v3195_v0  ;;  %1478 = vst [vmem:[%s1404_s8 + $0x68] sm:$0xff] (%p3459_p5), %v1477_v54 }
  0xfd   : > { %v908_v38 = vmul.f32 %v875_v8, %v2842_v22  ;;  %v859_v63 = vsub.f32 %v857_v60, %v851_v6 }
  0xfe   : > { %v1481_v0 = vld [vmem:[%s3101_s21 + $0x48] sm:$0xff] (%p3459_p5) }
  0xff   : > { %2038 = vst [vmem:[%s3101_s21 + $0x68] sm:$0xff] %v908_v38  ;;  %v877_v41 = vmul.f32 %v2983_v44, %v859_v63  ;;  %1401 = sbr.rel (!%p3459_p5) target bundleno = 268 (0x10c), region = 82  ;;  %v1467_v44 = vld [vmem:[%s3101_s21 + $0x10] sm:$0xff] (%p3459_p5)  ;;  %1482 = vst [vmem:[%s1404_s8 + $0x88] sm:$0xff] (%p3459_p5), %v1481_v0 }
 0x100   : > { %1468 = vst [vmem:[%s1404_s8 + $0x20] sm:$0xff] (%p3459_p5), %v1467_v44 }
 0x101   : > { %v913_v1 = vmul.f32 %v877_v41, %v2842_v22  ;;  %v1469_v22 = vld [vmem:[%s3101_s21 + $0x18] sm:$0xff] (%p3459_p5) }
 0x102   : > { %1470 = vst [vmem:[%s1404_s8 + $0x28] sm:$0xff] (%p3459_p5), %v1469_v22  ;;  %v1485_v40 = vld [vmem:[%s3101_s21 + $0x58] sm:$0xff] (%p3459_p5) }
 0x103   : > { %2040 = vst [vmem:[%s3101_s21 + $0x78] sm:$0xff] %v913_v1  ;;  %1486 = vst [vmem:[%s1404_s8 + $0xa8] sm:$0xff] (%p3459_p5), %v1485_v40 }
 0x106   : > { %v1489_v46 = vld [vmem:[%s3101_s21 + $0x68] sm:$0xff] }
 0x107   : > { %1490 = vst [vmem:[%s1404_s8 + $0xc8] sm:$0xff] %v1489_v46 }
 0x10a   : > { %v1493_v21 = vld [vmem:[%s3101_s21 + $0x78] sm:$0xff] }
 0x10b   : > { %1494 = vst [vmem:[%s1404_s8 + $0xe8] sm:$0xff] %v1493_v21 }
 0x10c PF: > { %p3460_p8 = scmp.ne.s32.totalorder %s3450_s30, 0 }
 0x10d   : > { %s2131_s9 = sshll.u32 (%p3460_p8), %s2337_s24, 4  ;;  %v1566_v15 = vld [vmem:[%s2876_s1] sm:$0xff] (%p3460_p8)  ;;  %v1568_v58 = vld [vmem:[%s2876_s1 + $0x8] sm:$0xff] (%p3460_p8)  ;;  %v1570_v9 = vld [vmem:[%s2876_s1 + $0x10] sm:$0xff] (%p3460_p8) }
 0x10e   : > { %1500 = sbr.rel (!%p3460_p8) target bundleno = 280 (0x118), region = 120  ;;  %s3287_s12 = scalar_lea.vmem (%p3460_p8), %s3441_s5, %s2131_s9  ;;  %v1572_v4 = vld [vmem:[%s2876_s1 + $0x18] sm:$0xff] (%p3460_p8)  ;;  %v1574_v27 = vld [vmem:[%s2876_s1 + $0x20] sm:$0xff] (%p3460_p8)  ;;  %v1576_v33 = vld [vmem:[%s2876_s1 + $0x28] sm:$0xff] (%p3460_p8) }
 0x10f   : > { %1567 = vst [vmem:[%s3287_s12] sm:$0xff] (%p3460_p8), %v1566_v15  ;;  %1569 = vst [vmem:[%s3287_s12 + $0x8] sm:$0xff] (%p3460_p8), %v1568_v58  ;;  %v1578_v52 = vld [vmem:[%s2876_s1 + $0x30] sm:$0xff] (%p3460_p8)  ;;  %v1580_v14 = vld [vmem:[%s2876_s1 + $0x38] sm:$0xff] (%p3460_p8) }
 0x110   : > { %1571 = vst [vmem:[%s3287_s12 + $0x20] sm:$0xff] (%p3460_p8), %v1570_v9  ;;  %1573 = vst [vmem:[%s3287_s12 + $0x28] sm:$0xff] (%p3460_p8), %v1572_v4  ;;  %v1582_v28 = vld [vmem:[%s2876_s1 + $0x40] sm:$0xff] (%p3460_p8)  ;;  %v1584_v39 = vld [vmem:[%s2876_s1 + $0x48] sm:$0xff] (%p3460_p8) }
 0x111   : > { %1575 = vst [vmem:[%s3287_s12 + $0x40] sm:$0xff] (%p3460_p8), %v1574_v27  ;;  %1577 = vst [vmem:[%s3287_s12 + $0x48] sm:$0xff] (%p3460_p8), %v1576_v33  ;;  %v1586_v7 = vld [vmem:[%s2876_s1 + $0x50] sm:$0xff] (%p3460_p8)  ;;  %v1588_v57 = vld [vmem:[%s2876_s1 + $0x58] sm:$0xff] (%p3460_p8) }
 0x112   : > { %1579 = vst [vmem:[%s3287_s12 + $0x60] sm:$0xff] (%p3460_p8), %v1578_v52  ;;  %1581 = vst [vmem:[%s3287_s12 + $0x68] sm:$0xff] (%p3460_p8), %v1580_v14  ;;  %v1590_v62 = vld [vmem:[%s2876_s1 + $0x60] sm:$0xff] (%p3460_p8)  ;;  %v1592_v36 = vld [vmem:[%s2876_s1 + $0x68] sm:$0xff] (%p3460_p8) }
 0x113   : > { %1583 = vst [vmem:[%s3287_s12 + $0x80] sm:$0xff] %v1582_v28  ;;  %1585 = vst [vmem:[%s3287_s12 + $0x88] sm:$0xff] %v1584_v39  ;;  %v1594_v49 = vld [vmem:[%s2876_s1 + $0x70] sm:$0xff]  ;;  %v1596_v47 = vld [vmem:[%s2876_s1 + $0x78] sm:$0xff] }
 0x114   : > { %1587 = vst [vmem:[%s3287_s12 + $0xa0] sm:$0xff] %v1586_v7  ;;  %1589 = vst [vmem:[%s3287_s12 + $0xa8] sm:$0xff] %v1588_v57  ;;  %v1598_v53 = vld [vmem:[%s2876_s1 + $0x80] sm:$0xff]  ;;  %v1600_v11 = vld [vmem:[%s2876_s1 + $0x88] sm:$0xff] }
 0x115   : > { %1591 = vst [vmem:[%s3287_s12 + $0xc0] sm:$0xff] %v1590_v62  ;;  %1593 = vst [vmem:[%s3287_s12 + $0xc8] sm:$0xff] %v1592_v36 }
 0x116   : > { %1595 = vst [vmem:[%s3287_s12 + $0xe0] sm:$0xff] %v1594_v49  ;;  %1597 = vst [vmem:[%s3287_s12 + $0xe8] sm:$0xff] %v1596_v47 }
 0x117   : > { %1599 = vst [vmem:[%s3287_s12 + $0x100] sm:$0xff] %v1598_v53  ;;  %1601 = vst [vmem:[%s3287_s12 + $0x108] sm:$0xff] %v1600_v11 }
 0x118 PF: > { %p3461_p9 = scmp.ne.s32.totalorder %s3450_s30, 0 }
 0x119   : > { %s2132_s13 = sshll.u32 (%p3461_p9), %s2337_s24, 4  ;;  %v1733_v45 = vld [vmem:[%s2955_s22] sm:$0xff] (%p3461_p9)  ;;  %v1735_v24 = vld [vmem:[%s2955_s22 + $0x8] sm:$0xff] (%p3461_p9)  ;;  %v1737_v32 = vld [vmem:[%s2955_s22 + $0x10] sm:$0xff] (%p3461_p9) }
 0x11a   : > { %1607 = sbr.rel (!%p3461_p9) target bundleno = 307 (0x133), region = 158  ;;  %s3331_s16 = scalar_lea.vmem (%p3461_p9), %s3442_s6, %s2132_s13  ;;  %v1739_v56 = vld [vmem:[%s2955_s22 + $0x18] sm:$0xff] (%p3461_p9)  ;;  %v1741_v10 = vld [vmem:[%s2955_s22 + $0x20] sm:$0xff] (%p3461_p9)  ;;  %v1743_v17 = vld [vmem:[%s2955_s22 + $0x28] sm:$0xff] (%p3461_p9) }
 0x11b   : > { %1734 = vst [vmem:[%s3331_s16] sm:$0xff] (%p3461_p9), %v1733_v45  ;;  %1736 = vst [vmem:[%s3331_s16 + $0x8] sm:$0xff] (%p3461_p9), %v1735_v24  ;;  %v1745_v25 = vld [vmem:[%s2955_s22 + $0x30] sm:$0xff] (%p3461_p9)  ;;  %v1747_v37 = vld [vmem:[%s2955_s22 + $0x38] sm:$0xff] (%p3461_p9) }
 0x11c   : > { %1738 = vst [vmem:[%s3331_s16 + $0x20] sm:$0xff] (%p3461_p9), %v1737_v32  ;;  %1740 = vst [vmem:[%s3331_s16 + $0x28] sm:$0xff] (%p3461_p9), %v1739_v56  ;;  %v1749_v16 = vld [vmem:[%s2955_s22 + $0x40] sm:$0xff] (%p3461_p9)  ;;  %v1751_v23 = vld [vmem:[%s2955_s22 + $0x48] sm:$0xff] (%p3461_p9) }
 0x11d   : > { %1742 = vst [vmem:[%s3331_s16 + $0x40] sm:$0xff] (%p3461_p9), %v1741_v10  ;;  %1744 = vst [vmem:[%s3331_s16 + $0x48] sm:$0xff] (%p3461_p9), %v1743_v17  ;;  %v1753_v20 = vld [vmem:[%s2955_s22 + $0x50] sm:$0xff] (%p3461_p9)  ;;  %v1755_v19 = vld [vmem:[%s2955_s22 + $0x58] sm:$0xff] (%p3461_p9) }
 0x11e   : > { %1746 = vst [vmem:[%s3331_s16 + $0x60] sm:$0xff] (%p3461_p9), %v1745_v25  ;;  %1748 = vst [vmem:[%s3331_s16 + $0x68] sm:$0xff] (%p3461_p9), %v1747_v37  ;;  %v1757_v59 = vld [vmem:[%s2955_s22 + $0x60] sm:$0xff] (%p3461_p9)  ;;  %v1759_v50 = vld [vmem:[%s2955_s22 + $0x68] sm:$0xff] (%p3461_p9) }
 0x11f   : > { %1750 = vst [vmem:[%s3331_s16 + $0x80] sm:$0xff] %v1749_v16  ;;  %1752 = vst [vmem:[%s3331_s16 + $0x88] sm:$0xff] %v1751_v23  ;;  %v1761_v42 = vld [vmem:[%s2955_s22 + $0x70] sm:$0xff]  ;;  %v1763_v35 = vld [vmem:[%s2955_s22 + $0x78] sm:$0xff] }
 0x120   : > { %1754 = vst [vmem:[%s3331_s16 + $0xa0] sm:$0xff] %v1753_v20  ;;  %1756 = vst [vmem:[%s3331_s16 + $0xa8] sm:$0xff] %v1755_v19  ;;  %v1765_v51 = vld [vmem:[%s2955_s22 + $0x80] sm:$0xff]  ;;  %v1767_v61 = vld [vmem:[%s2955_s22 + $0x88] sm:$0xff] }
 0x121   : > { %1758 = vst [vmem:[%s3331_s16 + $0xc0] sm:$0xff] %v1757_v59  ;;  %1760 = vst [vmem:[%s3331_s16 + $0xc8] sm:$0xff] %v1759_v50  ;;  %v1769_v30 = vld [vmem:[%s2955_s22 + $0x90] sm:$0xff]  ;;  %v1771_v6 = vld [vmem:[%s2955_s22 + $0x98] sm:$0xff] }
 0x122   : > { %1762 = vst [vmem:[%s3331_s16 + $0xe0] sm:$0xff] %v1761_v42  ;;  %1764 = vst [vmem:[%s3331_s16 + $0xe8] sm:$0xff] %v1763_v35  ;;  %v1773_v5 = vld [vmem:[%s2955_s22 + $0xa0] sm:$0xff]  ;;  %v1775_v43 = vld [vmem:[%s2955_s22 + $0xa8] sm:$0xff] }
 0x123   : > { %1766 = vst [vmem:[%s3331_s16 + $0x100] sm:$0xff] %v1765_v51  ;;  %1768 = vst [vmem:[%s3331_s16 + $0x108] sm:$0xff] %v1767_v61  ;;  %v1777_v26 = vld [vmem:[%s2955_s22 + $0xb0] sm:$0xff]  ;;  %v1779_v3 = vld [vmem:[%s2955_s22 + $0xb8] sm:$0xff] }
 0x124   : > { %1770 = vst [vmem:[%s3331_s16 + $0x120] sm:$0xff] %v1769_v30  ;;  %1772 = vst [vmem:[%s3331_s16 + $0x128] sm:$0xff] %v1771_v6  ;;  %v1781_v8 = vld [vmem:[%s2955_s22 + $0xc0] sm:$0xff]  ;;  %v1783_v60 = vld [vmem:[%s2955_s22 + $0xc8] sm:$0xff] }
 0x125   : > { %1774 = vst [vmem:[%s3331_s16 + $0x140] sm:$0xff] %v1773_v5  ;;  %1776 = vst [vmem:[%s3331_s16 + $0x148] sm:$0xff] %v1775_v43  ;;  %v1785_v38 = vld [vmem:[%s2955_s22 + $0xd0] sm:$0xff]  ;;  %v1787_v63 = vld [vmem:[%s2955_s22 + $0xd8] sm:$0xff] }
 0x126   : > { %1778 = vst [vmem:[%s3331_s16 + $0x160] sm:$0xff] %v1777_v26  ;;  %1780 = vst [vmem:[%s3331_s16 + $0x168] sm:$0xff] %v1779_v3  ;;  %v1789_v41 = vld [vmem:[%s2955_s22 + $0xe0] sm:$0xff]  ;;  %v1791_v1 = vld [vmem:[%s2955_s22 + $0xe8] sm:$0xff] }
 0x127   : > { %1782 = vst [vmem:[%s3331_s16 + $0x180] sm:$0xff] %v1781_v8  ;;  %1784 = vst [vmem:[%s3331_s16 + $0x188] sm:$0xff] %v1783_v60  ;;  %v1793_v55 = vld [vmem:[%s2955_s22 + $0xf0] sm:$0xff]  ;;  %v1795_v12 = vld [vmem:[%s2955_s22 + $0xf8] sm:$0xff] }
 0x128   : > { %1786 = vst [vmem:[%s3331_s16 + $0x1a0] sm:$0xff] %v1785_v38  ;;  %1788 = vst [vmem:[%s3331_s16 + $0x1a8] sm:$0xff] %v1787_v63  ;;  %v1797_v44 = vld [vmem:[%s2955_s22 + $0x100] sm:$0xff]  ;;  %v1799_v22 = vld [vmem:[%s2955_s22 + $0x108] sm:$0xff] }
 0x129   : > { %1790 = vst [vmem:[%s3331_s16 + $0x1c0] sm:$0xff] %v1789_v41  ;;  %1792 = vst [vmem:[%s3331_s16 + $0x1c8] sm:$0xff] %v1791_v1  ;;  %v1801_v34 = vld [vmem:[%s2955_s22 + $0x110] sm:$0xff]  ;;  %v1803_v29 = vld [vmem:[%s2955_s22 + $0x118] sm:$0xff] }
 0x12a   : > { %1794 = vst [vmem:[%s3331_s16 + $0x1e0] sm:$0xff] %v1793_v55  ;;  %1796 = vst [vmem:[%s3331_s16 + $0x1e8] sm:$0xff] %v1795_v12  ;;  %v1805_v13 = vld [vmem:[%s2955_s22 + $0x120] sm:$0xff]  ;;  %v1807_v54 = vld [vmem:[%s2955_s22 + $0x128] sm:$0xff] }
 0x12b   : > { %1798 = vst [vmem:[%s3331_s16 + $0x200] sm:$0xff] %v1797_v44  ;;  %1800 = vst [vmem:[%s3331_s16 + $0x208] sm:$0xff] %v1799_v22  ;;  %v1809_v31 = vld [vmem:[%s2955_s22 + $0x130] sm:$0xff]  ;;  %v1811_v0 = vld [vmem:[%s2955_s22 + $0x138] sm:$0xff] }
 0x12c   : > { %1802 = vst [vmem:[%s3331_s16 + $0x220] sm:$0xff] %v1801_v34  ;;  %1804 = vst [vmem:[%s3331_s16 + $0x228] sm:$0xff] %v1803_v29  ;;  %v1813_v18 = vld [vmem:[%s2955_s22 + $0x140] sm:$0xff]  ;;  %v1815_v40 = vld [vmem:[%s2955_s22 + $0x148] sm:$0xff] }
 0x12d   : > { %1806 = vst [vmem:[%s3331_s16 + $0x240] sm:$0xff] %v1805_v13  ;;  %1808 = vst [vmem:[%s3331_s16 + $0x248] sm:$0xff] %v1807_v54  ;;  %v1817_v48 = vld [vmem:[%s2955_s22 + $0x150] sm:$0xff]  ;;  %v1819_v46 = vld [vmem:[%s2955_s22 + $0x158] sm:$0xff] }
 0x12e   : > { %1810 = vst [vmem:[%s3331_s16 + $0x260] sm:$0xff] %v1809_v31  ;;  %1812 = vst [vmem:[%s3331_s16 + $0x268] sm:$0xff] %v1811_v0  ;;  %v1821_v2 = vld [vmem:[%s2955_s22 + $0x160] sm:$0xff]  ;;  %v1823_v21 = vld [vmem:[%s2955_s22 + $0x168] sm:$0xff] }
 0x12f   : > { %1814 = vst [vmem:[%s3331_s16 + $0x280] sm:$0xff] %v1813_v18  ;;  %1816 = vst [vmem:[%s3331_s16 + $0x288] sm:$0xff] %v1815_v40  ;;  %v1825_v15 = vld [vmem:[%s2955_s22 + $0x170] sm:$0xff]  ;;  %v1827_v58 = vld [vmem:[%s2955_s22 + $0x178] sm:$0xff] }
 0x130   : > { %1818 = vst [vmem:[%s3331_s16 + $0x2a0] sm:$0xff] %v1817_v48  ;;  %1820 = vst [vmem:[%s3331_s16 + $0x2a8] sm:$0xff] %v1819_v46 }
 0x131   : > { %1822 = vst [vmem:[%s3331_s16 + $0x2c0] sm:$0xff] %v1821_v2  ;;  %1824 = vst [vmem:[%s3331_s16 + $0x2c8] sm:$0xff] %v1823_v21 }
 0x132   : > { %1826 = vst [vmem:[%s3331_s16 + $0x2e0] sm:$0xff] %v1825_v15  ;;  %1828 = vst [vmem:[%s3331_s16 + $0x2e8] sm:$0xff] %v1827_v58 }
 0x133 PF: > { %s3462_s21 = sld [smem:[#allocation9_spill]]  ;;  %p15_p10 = scmp.ge.s32.totalorder %s2340_s25, 4  }
 0x134   : > { %s3463_s22 = sld [smem:[#allocation10_spill]]  ;;  %s3464_s23 = smov %s2340_s25 }
 0x135   :  { %17 = sbr.rel (!%p15_p10) target bundleno = 6 (0x6), region = 303 }
 0x13a   :  { %1866 = vsyncpa [#allocation4], 1 }
 0x13b   :  { %1868 = vsyncpa [#allocation4 + $0x1], 1 }

</bundles_post_ra>
